<compile_context>
chip_gen: v5e
topology: v5e:2x2
jax: 0.10.0
libtpu: 0.0.40
codegen_flags: <defaults>
</compile_context>

<pallas_src>
import jax
import jax.numpy as jnp
from jax.experimental import pallas as pl
from jax.experimental.pallas import tpu as pltpu

BATCH_TILE = 8     # sublane granularity
LANE = 128         # lane width
NEG_BIG = -1e30    # bias for padded class columns -> exp() == 0


def rnn_classify_kernel(tok_smem, embproj_ref, whh_ref, wcls_ref, bcls_ref,
                        out_ref, xproj_ref):
    """Fused gather + tanh-RNN recurrence + linear head + softmax (one batch tile).

    tok_smem    : (S*Bp,)   int32  SMEM, time-major token ids (index = t*Bp + b)
    embproj_ref : (V, D)    f32    emb_table @ W_ih^T + (b_ih + b_hh)
    whh_ref     : (D, D)    bf16   hidden->hidden weight, pre-transposed (h @ W)
    wcls_ref    : (D, Cp)   bf16   classifier weight, pre-transposed, zero-padded
    bcls_ref    : (1, Cp)   f32    classifier bias, NEG_BIG on padded columns
    out_ref     : (Bt, Cp)  f32    softmax probabilities for this batch tile
    xproj_ref   : (S*Bt, D) f32    VMEM scratch: projected inputs, time-major
    """
    Bt = out_ref.shape[0]
    S = xproj_ref.shape[0] // Bt
    Bp = tok_smem.shape[0] // S
    j = pl.program_id(0)                       # batch-tile index

    # --- Embedding gather + input projection + biases (off the serial chain).
    # One scalar-indexed dynamic row load per (t, b); O(S*B*D), independent of
    # vocab size (no one-hot).  Tokens come from the scalar path (SMEM).
    for t in range(S):
        for bb in range(Bt):
            tok = tok_smem[t * Bp + j * Bt + bb]
            xproj_ref[pl.ds(t * Bt + bb, 1), :] = embproj_ref[pl.ds(tok, 1), :]

    whh = whh_ref[...]                         # (D, D) bf16, vreg-resident
    h = jnp.zeros((Bt, whh.shape[0]), jnp.float32)

    # --- Serial recurrence (static unroll, S small):
    #   h_t = tanh(xproj_t + h_{t-1} @ W_hh^T)
    # Per step: one bf16 MXU op (f32 accumulate) + one VPU add + one EUP tanh.
    for t in range(S):
        xt = xproj_ref[pl.ds(t * Bt, Bt), :]   # (Bt, D) static, tile-aligned
        hw = jnp.dot(h.astype(jnp.bfloat16), whh,
                     preferred_element_type=jnp.float32)
        h = jnp.tanh(xt + hw)

    # --- Classifier head + softmax (epilogue, off the critical path).
    logits = jnp.dot(h.astype(jnp.bfloat16), wcls_ref[...],
                     preferred_element_type=jnp.float32) + bcls_ref[...]
    m = jnp.max(logits, axis=-1, keepdims=True)
    e = jnp.exp(logits - m)                    # padded cols: exp(-1e30) == 0
    denom = jnp.sum(e, axis=-1, keepdims=True)
    out_ref[...] = e * pl.reciprocal(denom, approx=False)   # exact: rows sum to 1


def prepare_params(emb_table, w_ih, w_hh, b_ih, b_hh, w_cls, b_cls):
    """One-time parameter prep (hoisted off the per-call path)."""
    D = emb_table.shape[1]
    C = w_cls.shape[0]
    Cp = ((C + LANE - 1) // LANE) * LANE       # lane-dense classifier width
    # Input projection + both biases folded into the embedding table.
    emb_proj = (emb_table @ w_ih.T + (b_ih + b_hh)[None, :]).astype(jnp.float32)
    # MXU operands in bf16 (f32 accumulation happens in-kernel).
    w_hh_t = w_hh.T.astype(jnp.bfloat16)                                   # (D, D)
    w_cls_t = jnp.zeros((D, Cp), jnp.bfloat16).at[:, :C].set(
        w_cls.T.astype(jnp.bfloat16))                                      # (D, Cp)
    b_cls_row = jnp.full((1, Cp), NEG_BIG, jnp.float32).at[0, :C].set(
        b_cls.astype(jnp.float32))                                         # (1, Cp)
    return emb_proj, w_hh_t, w_cls_t, b_cls_row


def rnn_model_forward(tokens, emb_proj, w_hh_t, w_cls_t, b_cls_row, num_classes):
    """tokens: (B, S) int32 -> softmax probs (B, num_classes)."""
    B, S = tokens.shape
    V, D = emb_proj.shape
    Cp = w_cls_t.shape[1]
    Bt = BATCH_TILE
    Bp = ((B + Bt - 1) // Bt) * Bt             # pad batch to sublane multiple

    # Padded rows use token 0 (padding_idx) -> bias-only inputs, sliced out below.
    tok = jnp.zeros((Bp, S), jnp.int32).at[:B, :].set(tokens.astype(jnp.int32))
    tok_tm = tok.T.reshape(Bp * S)             # time-major flat: index = t*Bp + b

    grid = (Bp // Bt,)                         # batch tiles ("parallel" -> v7x 2 TCs)
    out = pl.pallas_call(
        rnn_classify_kernel,
        out_shape=jax.ShapeDtypeStruct((Bp, Cp), jnp.float32),
        grid_spec=pltpu.PrefetchScalarGridSpec(
            num_scalar_prefetch=1,             # tokens -> SMEM (scalar path)
            grid=grid,
            in_specs=[
                pl.BlockSpec((V, D), lambda j, _tok: (0, 0)),
                pl.BlockSpec((D, D), lambda j, _tok: (0, 0)),
                pl.BlockSpec((D, Cp), lambda j, _tok: (0, 0)),
                pl.BlockSpec((1, Cp), lambda j, _tok: (0, 0)),
            ],
            out_specs=pl.BlockSpec((Bt, Cp), lambda j, _tok: (j, 0)),
            scratch_shapes=[pltpu.VMEM((S * Bt, D), jnp.float32)],
        ),
        compiler_params=pltpu.CompilerParams(
            dimension_semantics=("parallel",)),
    )(tok_tm, emb_proj, w_hh_t, w_cls_t, b_cls_row)
    return out[:B, :num_classes]


if __name__ == "__main__":
    # Small shapes consistent with the module.
    vocab_size = 16        # len(vocab)
    vector_dim = 32        # embedding dim == RNN hidden dim
    sentence_length = 8
    num_classes = 4
    batch = 2

    key = jax.random.PRNGKey(0)
    k_tok, k_emb, k_wih, k_whh, k_bih, k_bhh, k_wc, k_bc = jax.random.split(key, 8)

    emb_table = 0.1 * jax.random.normal(k_emb, (vocab_size, vector_dim), jnp.float32)
    emb_table = emb_table.at[0].set(0.0)                 # padding_idx=0
    w_ih = 0.1 * jax.random.normal(k_wih, (vector_dim, vector_dim), jnp.float32)
    w_hh = 0.1 * jax.random.normal(k_whh, (vector_dim, vector_dim), jnp.float32)
    b_ih = 0.1 * jax.random.normal(k_bih, (vector_dim,), jnp.float32)
    b_hh = 0.1 * jax.random.normal(k_bhh, (vector_dim,), jnp.float32)
    w_cls = 0.1 * jax.random.normal(k_wc, (num_classes, vector_dim), jnp.float32)
    b_cls = 0.1 * jax.random.normal(k_bc, (num_classes,), jnp.float32)

    tokens = jax.random.randint(k_tok, (batch, sentence_length), 0, vocab_size,
                                dtype=jnp.int32)

    params = prepare_params(emb_table, w_ih, w_hh, b_ih, b_hh, w_cls, b_cls)
    fwd = jax.jit(rnn_model_forward, static_argnums=(5,))
    probs = fwd(tokens, *params, num_classes)
    probs = jax.block_until_ready(probs)

    # Pure-JAX f32 reference of the same forward.
    def ref_forward(tokens):
        x = jnp.take(emb_table, tokens, axis=0)
        h = jnp.zeros((tokens.shape[0], vector_dim), jnp.float32)
        for t in range(sentence_length):
            h = jnp.tanh(x[:, t, :] @ w_ih.T + b_ih + h @ w_hh.T + b_hh)
        logits = h @ w_cls.T + b_cls
        return jax.nn.softmax(logits, axis=-1)

    ref = ref_forward(tokens)
    assert probs.shape == (batch, num_classes)
    # Tolerance covers bf16 MXU operands (f32 accumulation); softmax itself is exact.
    assert jnp.allclose(probs, ref, atol=1e-2, rtol=1e-2), (probs, ref)
    # Exact reciprocal in the epilogue -> rows sum to 1 to f32 precision.
    assert jnp.allclose(jnp.sum(probs, axis=-1), 1.0, atol=1e-5)
    print("KERNEL_OK")
</pallas_src>

<mosaic_0001>
module attributes {stable_mosaic.version = 11 : i64} {
  func.func @rnn_classify_kernel(%arg0: i32, %arg1: memref<64xi32, #tpu.memory_space<smem>>, %arg2: memref<16x32xf32, #tpu.memory_space<vmem>>, %arg3: memref<32x32xbf16, #tpu.memory_space<vmem>>, %arg4: memref<32x128xbf16, #tpu.memory_space<vmem>>, %arg5: memref<1x128xf32, #tpu.memory_space<vmem>>, %arg6: memref<8x128xf32, #tpu.memory_space<vmem>>, %arg7: memref<64x32xf32, #tpu.memory_space<vmem>>) attributes {dimension_semantics = [#tpu.dimension_semantics<parallel>], iteration_bounds = array<i64: 1>, scalar_prefetch = 1 : i64, scratch_operands = 1 : i64, tpu.core_type = #tpu.core_type<tc>, window_params = [{pipeline_mode = #tpu.pipeline_mode<synchronous>, transform_indices = @transform_0, window_bounds = array<i64: 16, 32>}, {pipeline_mode = #tpu.pipeline_mode<synchronous>, transform_indices = @transform_1, window_bounds = array<i64: 32, 32>}, {pipeline_mode = #tpu.pipeline_mode<synchronous>, transform_indices = @transform_2, window_bounds = array<i64: 32, 128>}, {pipeline_mode = #tpu.pipeline_mode<synchronous>, transform_indices = @transform_3, window_bounds = array<i64: 1, 128>}, {transform_indices = @transform_4, window_bounds = array<i64: 8, 128>}]} {
    %c8_i32 = arith.constant 8 : i32
    %0 = arith.muli %arg0, %c8_i32 : i32
    %c0_i32 = arith.constant 0 : i32
    %1 = arith.addi %c0_i32, %0 : i32
    %c0_i32_0 = arith.constant 0 : i32
    %2 = arith.addi %1, %c0_i32_0 : i32
    %3 = arith.index_cast %2 : i32 to index
    %4 = memref.load %arg1[%3] : memref<64xi32, #tpu.memory_space<smem>>
    %5 = arith.index_cast %4 : i32 to index
    %c0 = arith.constant 0 : index
    %6 = vector.load %arg2[%5, %c0] : memref<16x32xf32, #tpu.memory_space<vmem>>, vector<1x32xf32>
    %c0_1 = arith.constant 0 : index
    %c0_2 = arith.constant 0 : index
    %7 = vector.load %arg7[%c0_1, %c0_2] : memref<64x32xf32, #tpu.memory_space<vmem>>, vector<1x32xf32>
    tpu.vector_store %arg7[%c0_1, %c0_2], %6 {strides = array<i32>} : memref<64x32xf32, #tpu.memory_space<vmem>>, vector<1x32xf32>,
    %c8_i32_3 = arith.constant 8 : i32
    %8 = arith.muli %arg0, %c8_i32_3 : i32
    %c0_i32_4 = arith.constant 0 : i32
    %9 = arith.addi %c0_i32_4, %8 : i32
    %c1_i32 = arith.constant 1 : i32
    %10 = arith.addi %9, %c1_i32 : i32
    %11 = arith.index_cast %10 : i32 to index
    %12 = memref.load %arg1[%11] : memref<64xi32, #tpu.memory_space<smem>>
    %13 = arith.index_cast %12 : i32 to index
    %c0_5 = arith.constant 0 : index
    %14 = vector.load %arg2[%13, %c0_5] : memref<16x32xf32, #tpu.memory_space<vmem>>, vector<1x32xf32>
    %c1 = arith.constant 1 : index
    %c0_6 = arith.constant 0 : index
    %15 = vector.load %arg7[%c1, %c0_6] : memref<64x32xf32, #tpu.memory_space<vmem>>, vector<1x32xf32>
    tpu.vector_store %arg7[%c1, %c0_6], %14 {strides = array<i32>} : memref<64x32xf32, #tpu.memory_space<vmem>>, vector<1x32xf32>,
    %c8_i32_7 = arith.constant 8 : i32
    %16 = arith.muli %arg0, %c8_i32_7 : i32
    %c0_i32_8 = arith.constant 0 : i32
    %17 = arith.addi %c0_i32_8, %16 : i32
    %c2_i32 = arith.constant 2 : i32
    %18 = arith.addi %17, %c2_i32 : i32
    %19 = arith.index_cast %18 : i32 to index
    %20 = memref.load %arg1[%19] : memref<64xi32, #tpu.memory_space<smem>>
    %21 = arith.index_cast %20 : i32 to index
    %c0_9 = arith.constant 0 : index
    %22 = vector.load %arg2[%21, %c0_9] : memref<16x32xf32, #tpu.memory_space<vmem>>, vector<1x32xf32>
    %c2 = arith.constant 2 : index
    %c0_10 = arith.constant 0 : index
    %23 = vector.load %arg7[%c2, %c0_10] : memref<64x32xf32, #tpu.memory_space<vmem>>, vector<1x32xf32>
    tpu.vector_store %arg7[%c2, %c0_10], %22 {strides = array<i32>} : memref<64x32xf32, #tpu.memory_space<vmem>>, vector<1x32xf32>,
    %c8_i32_11 = arith.constant 8 : i32
    %24 = arith.muli %arg0, %c8_i32_11 : i32
    %c0_i32_12 = arith.constant 0 : i32
    %25 = arith.addi %c0_i32_12, %24 : i32
    %c3_i32 = arith.constant 3 : i32
    %26 = arith.addi %25, %c3_i32 : i32
    %27 = arith.index_cast %26 : i32 to index
    %28 = memref.load %arg1[%27] : memref<64xi32, #tpu.memory_space<smem>>
    %29 = arith.index_cast %28 : i32 to index
    %c0_13 = arith.constant 0 : index
    %30 = vector.load %arg2[%29, %c0_13] : memref<16x32xf32, #tpu.memory_space<vmem>>, vector<1x32xf32>
    %c3 = arith.constant 3 : index
    %c0_14 = arith.constant 0 : index
    %31 = vector.load %arg7[%c3, %c0_14] : memref<64x32xf32, #tpu.memory_space<vmem>>, vector<1x32xf32>
    tpu.vector_store %arg7[%c3, %c0_14], %30 {strides = array<i32>} : memref<64x32xf32, #tpu.memory_space<vmem>>, vector<1x32xf32>,
    %c8_i32_15 = arith.constant 8 : i32
    %32 = arith.muli %arg0, %c8_i32_15 : i32
    %c0_i32_16 = arith.constant 0 : i32
    %33 = arith.addi %c0_i32_16, %32 : i32
    %c4_i32 = arith.constant 4 : i32
    %34 = arith.addi %33, %c4_i32 : i32
    %35 = arith.index_cast %34 : i32 to index
    %36 = memref.load %arg1[%35] : memref<64xi32, #tpu.memory_space<smem>>
    %37 = arith.index_cast %36 : i32 to index
    %c0_17 = arith.constant 0 : index
    %38 = vector.load %arg2[%37, %c0_17] : memref<16x32xf32, #tpu.memory_space<vmem>>, vector<1x32xf32>
    %c4 = arith.constant 4 : index
    %c0_18 = arith.constant 0 : index
    %39 = vector.load %arg7[%c4, %c0_18] : memref<64x32xf32, #tpu.memory_space<vmem>>, vector<1x32xf32>
    tpu.vector_store %arg7[%c4, %c0_18], %38 {strides = array<i32>} : memref<64x32xf32, #tpu.memory_space<vmem>>, vector<1x32xf32>,
    %c8_i32_19 = arith.constant 8 : i32
    %40 = arith.muli %arg0, %c8_i32_19 : i32
    %c0_i32_20 = arith.constant 0 : i32
    %41 = arith.addi %c0_i32_20, %40 : i32
    %c5_i32 = arith.constant 5 : i32
    %42 = arith.addi %41, %c5_i32 : i32
    %43 = arith.index_cast %42 : i32 to index
    %44 = memref.load %arg1[%43] : memref<64xi32, #tpu.memory_space<smem>>
    %45 = arith.index_cast %44 : i32 to index
    %c0_21 = arith.constant 0 : index
    %46 = vector.load %arg2[%45, %c0_21] : memref<16x32xf32, #tpu.memory_space<vmem>>, vector<1x32xf32>
    %c5 = arith.constant 5 : index
    %c0_22 = arith.constant 0 : index
    %47 = vector.load %arg7[%c5, %c0_22] : memref<64x32xf32, #tpu.memory_space<vmem>>, vector<1x32xf32>
    tpu.vector_store %arg7[%c5, %c0_22], %46 {strides = array<i32>} : memref<64x32xf32, #tpu.memory_space<vmem>>, vector<1x32xf32>,
    %c8_i32_23 = arith.constant 8 : i32
    %48 = arith.muli %arg0, %c8_i32_23 : i32
    %c0_i32_24 = arith.constant 0 : i32
    %49 = arith.addi %c0_i32_24, %48 : i32
    %c6_i32 = arith.constant 6 : i32
    %50 = arith.addi %49, %c6_i32 : i32
    %51 = arith.index_cast %50 : i32 to index
    %52 = memref.load %arg1[%51] : memref<64xi32, #tpu.memory_space<smem>>
    %53 = arith.index_cast %52 : i32 to index
    %c0_25 = arith.constant 0 : index
    %54 = vector.load %arg2[%53, %c0_25] : memref<16x32xf32, #tpu.memory_space<vmem>>, vector<1x32xf32>
    %c6 = arith.constant 6 : index
    %c0_26 = arith.constant 0 : index
    %55 = vector.load %arg7[%c6, %c0_26] : memref<64x32xf32, #tpu.memory_space<vmem>>, vector<1x32xf32>
    tpu.vector_store %arg7[%c6, %c0_26], %54 {strides = array<i32>} : memref<64x32xf32, #tpu.memory_space<vmem>>, vector<1x32xf32>,
    %c8_i32_27 = arith.constant 8 : i32
    %56 = arith.muli %arg0, %c8_i32_27 : i32
    %c0_i32_28 = arith.constant 0 : i32
    %57 = arith.addi %c0_i32_28, %56 : i32
    %c7_i32 = arith.constant 7 : i32
    %58 = arith.addi %57, %c7_i32 : i32
    %59 = arith.index_cast %58 : i32 to index
    %60 = memref.load %arg1[%59] : memref<64xi32, #tpu.memory_space<smem>>
    %61 = arith.index_cast %60 : i32 to index
    %c0_29 = arith.constant 0 : index
    %62 = vector.load %arg2[%61, %c0_29] : memref<16x32xf32, #tpu.memory_space<vmem>>, vector<1x32xf32>
    %c7 = arith.constant 7 : index
    %c0_30 = arith.constant 0 : index
    %63 = vector.load %arg7[%c7, %c0_30] : memref<64x32xf32, #tpu.memory_space<vmem>>, vector<1x32xf32>
    tpu.vector_store %arg7[%c7, %c0_30], %62 {strides = array<i32>} : memref<64x32xf32, #tpu.memory_space<vmem>>, vector<1x32xf32>,
    %c8_i32_31 = arith.constant 8 : i32
    %64 = arith.muli %arg0, %c8_i32_31 : i32
    %c8_i32_32 = arith.constant 8 : i32
    %65 = arith.addi %c8_i32_32, %64 : i32
    %c0_i32_33 = arith.constant 0 : i32
    %66 = arith.addi %65, %c0_i32_33 : i32
    %67 = arith.index_cast %66 : i32 to index
    %68 = memref.load %arg1[%67] : memref<64xi32, #tpu.memory_space<smem>>
    %69 = arith.index_cast %68 : i32 to index
    %c0_34 = arith.constant 0 : index
    %70 = vector.load %arg2[%69, %c0_34] : memref<16x32xf32, #tpu.memory_space<vmem>>, vector<1x32xf32>
    %c8 = arith.constant 8 : index
    %c0_35 = arith.constant 0 : index
    %71 = vector.load %arg7[%c8, %c0_35] : memref<64x32xf32, #tpu.memory_space<vmem>>, vector<1x32xf32>
    tpu.vector_store %arg7[%c8, %c0_35], %70 {strides = array<i32>} : memref<64x32xf32, #tpu.memory_space<vmem>>, vector<1x32xf32>,
    %c8_i32_36 = arith.constant 8 : i32
    %72 = arith.muli %arg0, %c8_i32_36 : i32
    %c8_i32_37 = arith.constant 8 : i32
    %73 = arith.addi %c8_i32_37, %72 : i32
    %c1_i32_38 = arith.constant 1 : i32
    %74 = arith.addi %73, %c1_i32_38 : i32
    %75 = arith.index_cast %74 : i32 to index
    %76 = memref.load %arg1[%75] : memref<64xi32, #tpu.memory_space<smem>>
    %77 = arith.index_cast %76 : i32 to index
    %c0_39 = arith.constant 0 : index
    %78 = vector.load %arg2[%77, %c0_39] : memref<16x32xf32, #tpu.memory_space<vmem>>, vector<1x32xf32>
    %c9 = arith.constant 9 : index
    %c0_40 = arith.constant 0 : index
    %79 = vector.load %arg7[%c9, %c0_40] : memref<64x32xf32, #tpu.memory_space<vmem>>, vector<1x32xf32>
    tpu.vector_store %arg7[%c9, %c0_40], %78 {strides = array<i32>} : memref<64x32xf32, #tpu.memory_space<vmem>>, vector<1x32xf32>,
    %c8_i32_41 = arith.constant 8 : i32
    %80 = arith.muli %arg0, %c8_i32_41 : i32
    %c8_i32_42 = arith.constant 8 : i32
    %81 = arith.addi %c8_i32_42, %80 : i32
    %c2_i32_43 = arith.constant 2 : i32
    %82 = arith.addi %81, %c2_i32_43 : i32
    %83 = arith.index_cast %82 : i32 to index
    %84 = memref.load %arg1[%83] : memref<64xi32, #tpu.memory_space<smem>>
    %85 = arith.index_cast %84 : i32 to index
    %c0_44 = arith.constant 0 : index
    %86 = vector.load %arg2[%85, %c0_44] : memref<16x32xf32, #tpu.memory_space<vmem>>, vector<1x32xf32>
    %c10 = arith.constant 10 : index
    %c0_45 = arith.constant 0 : index
    %87 = vector.load %arg7[%c10, %c0_45] : memref<64x32xf32, #tpu.memory_space<vmem>>, vector<1x32xf32>
    tpu.vector_store %arg7[%c10, %c0_45], %86 {strides = array<i32>} : memref<64x32xf32, #tpu.memory_space<vmem>>, vector<1x32xf32>,
    %c8_i32_46 = arith.constant 8 : i32
    %88 = arith.muli %arg0, %c8_i32_46 : i32
    %c8_i32_47 = arith.constant 8 : i32
    %89 = arith.addi %c8_i32_47, %88 : i32
    %c3_i32_48 = arith.constant 3 : i32
    %90 = arith.addi %89, %c3_i32_48 : i32
    %91 = arith.index_cast %90 : i32 to index
    %92 = memref.load %arg1[%91] : memref<64xi32, #tpu.memory_space<smem>>
    %93 = arith.index_cast %92 : i32 to index
    %c0_49 = arith.constant 0 : index
    %94 = vector.load %arg2[%93, %c0_49] : memref<16x32xf32, #tpu.memory_space<vmem>>, vector<1x32xf32>
    %c11 = arith.constant 11 : index
    %c0_50 = arith.constant 0 : index
    %95 = vector.load %arg7[%c11, %c0_50] : memref<64x32xf32, #tpu.memory_space<vmem>>, vector<1x32xf32>
    tpu.vector_store %arg7[%c11, %c0_50], %94 {strides = array<i32>} : memref<64x32xf32, #tpu.memory_space<vmem>>, vector<1x32xf32>,
    %c8_i32_51 = arith.constant 8 : i32
    %96 = arith.muli %arg0, %c8_i32_51 : i32
    %c8_i32_52 = arith.constant 8 : i32
    %97 = arith.addi %c8_i32_52, %96 : i32
    %c4_i32_53 = arith.constant 4 : i32
    %98 = arith.addi %97, %c4_i32_53 : i32
    %99 = arith.index_cast %98 : i32 to index
    %100 = memref.load %arg1[%99] : memref<64xi32, #tpu.memory_space<smem>>
    %101 = arith.index_cast %100 : i32 to index
    %c0_54 = arith.constant 0 : index
    %102 = vector.load %arg2[%101, %c0_54] : memref<16x32xf32, #tpu.memory_space<vmem>>, vector<1x32xf32>
    %c12 = arith.constant 12 : index
    %c0_55 = arith.constant 0 : index
    %103 = vector.load %arg7[%c12, %c0_55] : memref<64x32xf32, #tpu.memory_space<vmem>>, vector<1x32xf32>
    tpu.vector_store %arg7[%c12, %c0_55], %102 {strides = array<i32>} : memref<64x32xf32, #tpu.memory_space<vmem>>, vector<1x32xf32>,
    %c8_i32_56 = arith.constant 8 : i32
    %104 = arith.muli %arg0, %c8_i32_56 : i32
    %c8_i32_57 = arith.constant 8 : i32
    %105 = arith.addi %c8_i32_57, %104 : i32
    %c5_i32_58 = arith.constant 5 : i32
    %106 = arith.addi %105, %c5_i32_58 : i32
    %107 = arith.index_cast %106 : i32 to index
    %108 = memref.load %arg1[%107] : memref<64xi32, #tpu.memory_space<smem>>
    %109 = arith.index_cast %108 : i32 to index
    %c0_59 = arith.constant 0 : index
    %110 = vector.load %arg2[%109, %c0_59] : memref<16x32xf32, #tpu.memory_space<vmem>>, vector<1x32xf32>
    %c13 = arith.constant 13 : index
    %c0_60 = arith.constant 0 : index
    %111 = vector.load %arg7[%c13, %c0_60] : memref<64x32xf32, #tpu.memory_space<vmem>>, vector<1x32xf32>
    tpu.vector_store %arg7[%c13, %c0_60], %110 {strides = array<i32>} : memref<64x32xf32, #tpu.memory_space<vmem>>, vector<1x32xf32>,
    %c8_i32_61 = arith.constant 8 : i32
    %112 = arith.muli %arg0, %c8_i32_61 : i32
    %c8_i32_62 = arith.constant 8 : i32
    %113 = arith.addi %c8_i32_62, %112 : i32
    %c6_i32_63 = arith.constant 6 : i32
    %114 = arith.addi %113, %c6_i32_63 : i32
    %115 = arith.index_cast %114 : i32 to index
    %116 = memref.load %arg1[%115] : memref<64xi32, #tpu.memory_space<smem>>
    %117 = arith.index_cast %116 : i32 to index
    %c0_64 = arith.constant 0 : index
    %118 = vector.load %arg2[%117, %c0_64] : memref<16x32xf32, #tpu.memory_space<vmem>>, vector<1x32xf32>
    %c14 = arith.constant 14 : index
    %c0_65 = arith.constant 0 : index
    %119 = vector.load %arg7[%c14, %c0_65] : memref<64x32xf32, #tpu.memory_space<vmem>>, vector<1x32xf32>
    tpu.vector_store %arg7[%c14, %c0_65], %118 {strides = array<i32>} : memref<64x32xf32, #tpu.memory_space<vmem>>, vector<1x32xf32>,
    %c8_i32_66 = arith.constant 8 : i32
    %120 = arith.muli %arg0, %c8_i32_66 : i32
    %c8_i32_67 = arith.constant 8 : i32
    %121 = arith.addi %c8_i32_67, %120 : i32
    %c7_i32_68 = arith.constant 7 : i32
    %122 = arith.addi %121, %c7_i32_68 : i32
    %123 = arith.index_cast %122 : i32 to index
    %124 = memref.load %arg1[%123] : memref<64xi32, #tpu.memory_space<smem>>
    %125 = arith.index_cast %124 : i32 to index
    %c0_69 = arith.constant 0 : index
    %126 = vector.load %arg2[%125, %c0_69] : memref<16x32xf32, #tpu.memory_space<vmem>>, vector<1x32xf32>
    %c15 = arith.constant 15 : index
    %c0_70 = arith.constant 0 : index
    %127 = vector.load %arg7[%c15, %c0_70] : memref<64x32xf32, #tpu.memory_space<vmem>>, vector<1x32xf32>
    tpu.vector_store %arg7[%c15, %c0_70], %126 {strides = array<i32>} : memref<64x32xf32, #tpu.memory_space<vmem>>, vector<1x32xf32>,
    %c8_i32_71 = arith.constant 8 : i32
    %128 = arith.muli %arg0, %c8_i32_71 : i32
    %c16_i32 = arith.constant 16 : i32
    %129 = arith.addi %c16_i32, %128 : i32
    %c0_i32_72 = arith.constant 0 : i32
    %130 = arith.addi %129, %c0_i32_72 : i32
    %131 = arith.index_cast %130 : i32 to index
    %132 = memref.load %arg1[%131] : memref<64xi32, #tpu.memory_space<smem>>
    %133 = arith.index_cast %132 : i32 to index
    %c0_73 = arith.constant 0 : index
    %134 = vector.load %arg2[%133, %c0_73] : memref<16x32xf32, #tpu.memory_space<vmem>>, vector<1x32xf32>
    %c16 = arith.constant 16 : index
    %c0_74 = arith.constant 0 : index
    %135 = vector.load %arg7[%c16, %c0_74] : memref<64x32xf32, #tpu.memory_space<vmem>>, vector<1x32xf32>
    tpu.vector_store %arg7[%c16, %c0_74], %134 {strides = array<i32>} : memref<64x32xf32, #tpu.memory_space<vmem>>, vector<1x32xf32>,
    %c8_i32_75 = arith.constant 8 : i32
    %136 = arith.muli %arg0, %c8_i32_75 : i32
    %c16_i32_76 = arith.constant 16 : i32
    %137 = arith.addi %c16_i32_76, %136 : i32
    %c1_i32_77 = arith.constant 1 : i32
    %138 = arith.addi %137, %c1_i32_77 : i32
    %139 = arith.index_cast %138 : i32 to index
    %140 = memref.load %arg1[%139] : memref<64xi32, #tpu.memory_space<smem>>
    %141 = arith.index_cast %140 : i32 to index
    %c0_78 = arith.constant 0 : index
    %142 = vector.load %arg2[%141, %c0_78] : memref<16x32xf32, #tpu.memory_space<vmem>>, vector<1x32xf32>
    %c17 = arith.constant 17 : index
    %c0_79 = arith.constant 0 : index
    %143 = vector.load %arg7[%c17, %c0_79] : memref<64x32xf32, #tpu.memory_space<vmem>>, vector<1x32xf32>
    tpu.vector_store %arg7[%c17, %c0_79], %142 {strides = array<i32>} : memref<64x32xf32, #tpu.memory_space<vmem>>, vector<1x32xf32>,
    %c8_i32_80 = arith.constant 8 : i32
    %144 = arith.muli %arg0, %c8_i32_80 : i32
    %c16_i32_81 = arith.constant 16 : i32
    %145 = arith.addi %c16_i32_81, %144 : i32
    %c2_i32_82 = arith.constant 2 : i32
    %146 = arith.addi %145, %c2_i32_82 : i32
    %147 = arith.index_cast %146 : i32 to index
    %148 = memref.load %arg1[%147] : memref<64xi32, #tpu.memory_space<smem>>
    %149 = arith.index_cast %148 : i32 to index
    %c0_83 = arith.constant 0 : index
    %150 = vector.load %arg2[%149, %c0_83] : memref<16x32xf32, #tpu.memory_space<vmem>>, vector<1x32xf32>
    %c18 = arith.constant 18 : index
    %c0_84 = arith.constant 0 : index
    %151 = vector.load %arg7[%c18, %c0_84] : memref<64x32xf32, #tpu.memory_space<vmem>>, vector<1x32xf32>
    tpu.vector_store %arg7[%c18, %c0_84], %150 {strides = array<i32>} : memref<64x32xf32, #tpu.memory_space<vmem>>, vector<1x32xf32>,
    %c8_i32_85 = arith.constant 8 : i32
    %152 = arith.muli %arg0, %c8_i32_85 : i32
    %c16_i32_86 = arith.constant 16 : i32
    %153 = arith.addi %c16_i32_86, %152 : i32
    %c3_i32_87 = arith.constant 3 : i32
    %154 = arith.addi %153, %c3_i32_87 : i32
    %155 = arith.index_cast %154 : i32 to index
    %156 = memref.load %arg1[%155] : memref<64xi32, #tpu.memory_space<smem>>
    %157 = arith.index_cast %156 : i32 to index
    %c0_88 = arith.constant 0 : index
    %158 = vector.load %arg2[%157, %c0_88] : memref<16x32xf32, #tpu.memory_space<vmem>>, vector<1x32xf32>
    %c19 = arith.constant 19 : index
    %c0_89 = arith.constant 0 : index
    %159 = vector.load %arg7[%c19, %c0_89] : memref<64x32xf32, #tpu.memory_space<vmem>>, vector<1x32xf32>
    tpu.vector_store %arg7[%c19, %c0_89], %158 {strides = array<i32>} : memref<64x32xf32, #tpu.memory_space<vmem>>, vector<1x32xf32>,
    %c8_i32_90 = arith.constant 8 : i32
    %160 = arith.muli %arg0, %c8_i32_90 : i32
    %c16_i32_91 = arith.constant 16 : i32
    %161 = arith.addi %c16_i32_91, %160 : i32
    %c4_i32_92 = arith.constant 4 : i32
    %162 = arith.addi %161, %c4_i32_92 : i32
    %163 = arith.index_cast %162 : i32 to index
    %164 = memref.load %arg1[%163] : memref<64xi32, #tpu.memory_space<smem>>
    %165 = arith.index_cast %164 : i32 to index
    %c0_93 = arith.constant 0 : index
    %166 = vector.load %arg2[%165, %c0_93] : memref<16x32xf32, #tpu.memory_space<vmem>>, vector<1x32xf32>
    %c20 = arith.constant 20 : index
    %c0_94 = arith.constant 0 : index
    %167 = vector.load %arg7[%c20, %c0_94] : memref<64x32xf32, #tpu.memory_space<vmem>>, vector<1x32xf32>
    tpu.vector_store %arg7[%c20, %c0_94], %166 {strides = array<i32>} : memref<64x32xf32, #tpu.memory_space<vmem>>, vector<1x32xf32>,
    %c8_i32_95 = arith.constant 8 : i32
    %168 = arith.muli %arg0, %c8_i32_95 : i32
    %c16_i32_96 = arith.constant 16 : i32
    %169 = arith.addi %c16_i32_96, %168 : i32
    %c5_i32_97 = arith.constant 5 : i32
    %170 = arith.addi %169, %c5_i32_97 : i32
    %171 = arith.index_cast %170 : i32 to index
    %172 = memref.load %arg1[%171] : memref<64xi32, #tpu.memory_space<smem>>
    %173 = arith.index_cast %172 : i32 to index
    %c0_98 = arith.constant 0 : index
    %174 = vector.load %arg2[%173, %c0_98] : memref<16x32xf32, #tpu.memory_space<vmem>>, vector<1x32xf32>
    %c21 = arith.constant 21 : index
    %c0_99 = arith.constant 0 : index
    %175 = vector.load %arg7[%c21, %c0_99] : memref<64x32xf32, #tpu.memory_space<vmem>>, vector<1x32xf32>
    tpu.vector_store %arg7[%c21, %c0_99], %174 {strides = array<i32>} : memref<64x32xf32, #tpu.memory_space<vmem>>, vector<1x32xf32>,
    %c8_i32_100 = arith.constant 8 : i32
    %176 = arith.muli %arg0, %c8_i32_100 : i32
    %c16_i32_101 = arith.constant 16 : i32
    %177 = arith.addi %c16_i32_101, %176 : i32
    %c6_i32_102 = arith.constant 6 : i32
    %178 = arith.addi %177, %c6_i32_102 : i32
    %179 = arith.index_cast %178 : i32 to index
    %180 = memref.load %arg1[%179] : memref<64xi32, #tpu.memory_space<smem>>
    %181 = arith.index_cast %180 : i32 to index
    %c0_103 = arith.constant 0 : index
    %182 = vector.load %arg2[%181, %c0_103] : memref<16x32xf32, #tpu.memory_space<vmem>>, vector<1x32xf32>
    %c22 = arith.constant 22 : index
    %c0_104 = arith.constant 0 : index
    %183 = vector.load %arg7[%c22, %c0_104] : memref<64x32xf32, #tpu.memory_space<vmem>>, vector<1x32xf32>
    tpu.vector_store %arg7[%c22, %c0_104], %182 {strides = array<i32>} : memref<64x32xf32, #tpu.memory_space<vmem>>, vector<1x32xf32>,
    %c8_i32_105 = arith.constant 8 : i32
    %184 = arith.muli %arg0, %c8_i32_105 : i32
    %c16_i32_106 = arith.constant 16 : i32
    %185 = arith.addi %c16_i32_106, %184 : i32
    %c7_i32_107 = arith.constant 7 : i32
    %186 = arith.addi %185, %c7_i32_107 : i32
    %187 = arith.index_cast %186 : i32 to index
    %188 = memref.load %arg1[%187] : memref<64xi32, #tpu.memory_space<smem>>
    %189 = arith.index_cast %188 : i32 to index
    %c0_108 = arith.constant 0 : index
    %190 = vector.load %arg2[%189, %c0_108] : memref<16x32xf32, #tpu.memory_space<vmem>>, vector<1x32xf32>
    %c23 = arith.constant 23 : index
    %c0_109 = arith.constant 0 : index
    %191 = vector.load %arg7[%c23, %c0_109] : memref<64x32xf32, #tpu.memory_space<vmem>>, vector<1x32xf32>
    tpu.vector_store %arg7[%c23, %c0_109], %190 {strides = array<i32>} : memref<64x32xf32, #tpu.memory_space<vmem>>, vector<1x32xf32>,
    %c8_i32_110 = arith.constant 8 : i32
    %192 = arith.muli %arg0, %c8_i32_110 : i32
    %c24_i32 = arith.constant 24 : i32
    %193 = arith.addi %c24_i32, %192 : i32
    %c0_i32_111 = arith.constant 0 : i32
    %194 = arith.addi %193, %c0_i32_111 : i32
    %195 = arith.index_cast %194 : i32 to index
    %196 = memref.load %arg1[%195] : memref<64xi32, #tpu.memory_space<smem>>
    %197 = arith.index_cast %196 : i32 to index
    %c0_112 = arith.constant 0 : index
    %198 = vector.load %arg2[%197, %c0_112] : memref<16x32xf32, #tpu.memory_space<vmem>>, vector<1x32xf32>
    %c24 = arith.constant 24 : index
    %c0_113 = arith.constant 0 : index
    %199 = vector.load %arg7[%c24, %c0_113] : memref<64x32xf32, #tpu.memory_space<vmem>>, vector<1x32xf32>
    tpu.vector_store %arg7[%c24, %c0_113], %198 {strides = array<i32>} : memref<64x32xf32, #tpu.memory_space<vmem>>, vector<1x32xf32>,
    %c8_i32_114 = arith.constant 8 : i32
    %200 = arith.muli %arg0, %c8_i32_114 : i32
    %c24_i32_115 = arith.constant 24 : i32
    %201 = arith.addi %c24_i32_115, %200 : i32
    %c1_i32_116 = arith.constant 1 : i32
    %202 = arith.addi %201, %c1_i32_116 : i32
    %203 = arith.index_cast %202 : i32 to index
    %204 = memref.load %arg1[%203] : memref<64xi32, #tpu.memory_space<smem>>
    %205 = arith.index_cast %204 : i32 to index
    %c0_117 = arith.constant 0 : index
    %206 = vector.load %arg2[%205, %c0_117] : memref<16x32xf32, #tpu.memory_space<vmem>>, vector<1x32xf32>
    %c25 = arith.constant 25 : index
    %c0_118 = arith.constant 0 : index
    %207 = vector.load %arg7[%c25, %c0_118] : memref<64x32xf32, #tpu.memory_space<vmem>>, vector<1x32xf32>
    tpu.vector_store %arg7[%c25, %c0_118], %206 {strides = array<i32>} : memref<64x32xf32, #tpu.memory_space<vmem>>, vector<1x32xf32>,
    %c8_i32_119 = arith.constant 8 : i32
    %208 = arith.muli %arg0, %c8_i32_119 : i32
    %c24_i32_120 = arith.constant 24 : i32
    %209 = arith.addi %c24_i32_120, %208 : i32
    %c2_i32_121 = arith.constant 2 : i32
    %210 = arith.addi %209, %c2_i32_121 : i32
    %211 = arith.index_cast %210 : i32 to index
    %212 = memref.load %arg1[%211] : memref<64xi32, #tpu.memory_space<smem>>
    %213 = arith.index_cast %212 : i32 to index
    %c0_122 = arith.constant 0 : index
    %214 = vector.load %arg2[%213, %c0_122] : memref<16x32xf32, #tpu.memory_space<vmem>>, vector<1x32xf32>
    %c26 = arith.constant 26 : index
    %c0_123 = arith.constant 0 : index
    %215 = vector.load %arg7[%c26, %c0_123] : memref<64x32xf32, #tpu.memory_space<vmem>>, vector<1x32xf32>
    tpu.vector_store %arg7[%c26, %c0_123], %214 {strides = array<i32>} : memref<64x32xf32, #tpu.memory_space<vmem>>, vector<1x32xf32>,
    %c8_i32_124 = arith.constant 8 : i32
    %216 = arith.muli %arg0, %c8_i32_124 : i32
    %c24_i32_125 = arith.constant 24 : i32
    %217 = arith.addi %c24_i32_125, %216 : i32
    %c3_i32_126 = arith.constant 3 : i32
    %218 = arith.addi %217, %c3_i32_126 : i32
    %219 = arith.index_cast %218 : i32 to index
    %220 = memref.load %arg1[%219] : memref<64xi32, #tpu.memory_space<smem>>
    %221 = arith.index_cast %220 : i32 to index
    %c0_127 = arith.constant 0 : index
    %222 = vector.load %arg2[%221, %c0_127] : memref<16x32xf32, #tpu.memory_space<vmem>>, vector<1x32xf32>
    %c27 = arith.constant 27 : index
    %c0_128 = arith.constant 0 : index
    %223 = vector.load %arg7[%c27, %c0_128] : memref<64x32xf32, #tpu.memory_space<vmem>>, vector<1x32xf32>
    tpu.vector_store %arg7[%c27, %c0_128], %222 {strides = array<i32>} : memref<64x32xf32, #tpu.memory_space<vmem>>, vector<1x32xf32>,
    %c8_i32_129 = arith.constant 8 : i32
    %224 = arith.muli %arg0, %c8_i32_129 : i32
    %c24_i32_130 = arith.constant 24 : i32
    %225 = arith.addi %c24_i32_130, %224 : i32
    %c4_i32_131 = arith.constant 4 : i32
    %226 = arith.addi %225, %c4_i32_131 : i32
    %227 = arith.index_cast %226 : i32 to index
    %228 = memref.load %arg1[%227] : memref<64xi32, #tpu.memory_space<smem>>
    %229 = arith.index_cast %228 : i32 to index
    %c0_132 = arith.constant 0 : index
    %230 = vector.load %arg2[%229, %c0_132] : memref<16x32xf32, #tpu.memory_space<vmem>>, vector<1x32xf32>
    %c28 = arith.constant 28 : index
    %c0_133 = arith.constant 0 : index
    %231 = vector.load %arg7[%c28, %c0_133] : memref<64x32xf32, #tpu.memory_space<vmem>>, vector<1x32xf32>
    tpu.vector_store %arg7[%c28, %c0_133], %230 {strides = array<i32>} : memref<64x32xf32, #tpu.memory_space<vmem>>, vector<1x32xf32>,
    %c8_i32_134 = arith.constant 8 : i32
    %232 = arith.muli %arg0, %c8_i32_134 : i32
    %c24_i32_135 = arith.constant 24 : i32
    %233 = arith.addi %c24_i32_135, %232 : i32
    %c5_i32_136 = arith.constant 5 : i32
    %234 = arith.addi %233, %c5_i32_136 : i32
    %235 = arith.index_cast %234 : i32 to index
    %236 = memref.load %arg1[%235] : memref<64xi32, #tpu.memory_space<smem>>
    %237 = arith.index_cast %236 : i32 to index
    %c0_137 = arith.constant 0 : index
    %238 = vector.load %arg2[%237, %c0_137] : memref<16x32xf32, #tpu.memory_space<vmem>>, vector<1x32xf32>
    %c29 = arith.constant 29 : index
    %c0_138 = arith.constant 0 : index
    %239 = vector.load %arg7[%c29, %c0_138] : memref<64x32xf32, #tpu.memory_space<vmem>>, vector<1x32xf32>
    tpu.vector_store %arg7[%c29, %c0_138], %238 {strides = array<i32>} : memref<64x32xf32, #tpu.memory_space<vmem>>, vector<1x32xf32>,
    %c8_i32_139 = arith.constant 8 : i32
    %240 = arith.muli %arg0, %c8_i32_139 : i32
    %c24_i32_140 = arith.constant 24 : i32
    %241 = arith.addi %c24_i32_140, %240 : i32
    %c6_i32_141 = arith.constant 6 : i32
    %242 = arith.addi %241, %c6_i32_141 : i32
    %243 = arith.index_cast %242 : i32 to index
    %244 = memref.load %arg1[%243] : memref<64xi32, #tpu.memory_space<smem>>
    %245 = arith.index_cast %244 : i32 to index
    %c0_142 = arith.constant 0 : index
    %246 = vector.load %arg2[%245, %c0_142] : memref<16x32xf32, #tpu.memory_space<vmem>>, vector<1x32xf32>
    %c30 = arith.constant 30 : index
    %c0_143 = arith.constant 0 : index
    %247 = vector.load %arg7[%c30, %c0_143] : memref<64x32xf32, #tpu.memory_space<vmem>>, vector<1x32xf32>
    tpu.vector_store %arg7[%c30, %c0_143], %246 {strides = array<i32>} : memref<64x32xf32, #tpu.memory_space<vmem>>, vector<1x32xf32>,
    %c8_i32_144 = arith.constant 8 : i32
    %248 = arith.muli %arg0, %c8_i32_144 : i32
    %c24_i32_145 = arith.constant 24 : i32
    %249 = arith.addi %c24_i32_145, %248 : i32
    %c7_i32_146 = arith.constant 7 : i32
    %250 = arith.addi %249, %c7_i32_146 : i32
    %251 = arith.index_cast %250 : i32 to index
    %252 = memref.load %arg1[%251] : memref<64xi32, #tpu.memory_space<smem>>
    %253 = arith.index_cast %252 : i32 to index
    %c0_147 = arith.constant 0 : index
    %254 = vector.load %arg2[%253, %c0_147] : memref<16x32xf32, #tpu.memory_space<vmem>>, vector<1x32xf32>
    %c31 = arith.constant 31 : index
    %c0_148 = arith.constant 0 : index
    %255 = vector.load %arg7[%c31, %c0_148] : memref<64x32xf32, #tpu.memory_space<vmem>>, vector<1x32xf32>
    tpu.vector_store %arg7[%c31, %c0_148], %254 {strides = array<i32>} : memref<64x32xf32, #tpu.memory_space<vmem>>, vector<1x32xf32>,
    %c8_i32_149 = arith.constant 8 : i32
    %256 = arith.muli %arg0, %c8_i32_149 : i32
    %c32_i32 = arith.constant 32 : i32
    %257 = arith.addi %c32_i32, %256 : i32
    %c0_i32_150 = arith.constant 0 : i32
    %258 = arith.addi %257, %c0_i32_150 : i32
    %259 = arith.index_cast %258 : i32 to index
    %260 = memref.load %arg1[%259] : memref<64xi32, #tpu.memory_space<smem>>
    %261 = arith.index_cast %260 : i32 to index
    %c0_151 = arith.constant 0 : index
    %262 = vector.load %arg2[%261, %c0_151] : memref<16x32xf32, #tpu.memory_space<vmem>>, vector<1x32xf32>
    %c32 = arith.constant 32 : index
    %c0_152 = arith.constant 0 : index
    %263 = vector.load %arg7[%c32, %c0_152] : memref<64x32xf32, #tpu.memory_space<vmem>>, vector<1x32xf32>
    tpu.vector_store %arg7[%c32, %c0_152], %262 {strides = array<i32>} : memref<64x32xf32, #tpu.memory_space<vmem>>, vector<1x32xf32>,
    %c8_i32_153 = arith.constant 8 : i32
    %264 = arith.muli %arg0, %c8_i32_153 : i32
    %c32_i32_154 = arith.constant 32 : i32
    %265 = arith.addi %c32_i32_154, %264 : i32
    %c1_i32_155 = arith.constant 1 : i32
    %266 = arith.addi %265, %c1_i32_155 : i32
    %267 = arith.index_cast %266 : i32 to index
    %268 = memref.load %arg1[%267] : memref<64xi32, #tpu.memory_space<smem>>
    %269 = arith.index_cast %268 : i32 to index
    %c0_156 = arith.constant 0 : index
    %270 = vector.load %arg2[%269, %c0_156] : memref<16x32xf32, #tpu.memory_space<vmem>>, vector<1x32xf32>
    %c33 = arith.constant 33 : index
    %c0_157 = arith.constant 0 : index
    %271 = vector.load %arg7[%c33, %c0_157] : memref<64x32xf32, #tpu.memory_space<vmem>>, vector<1x32xf32>
    tpu.vector_store %arg7[%c33, %c0_157], %270 {strides = array<i32>} : memref<64x32xf32, #tpu.memory_space<vmem>>, vector<1x32xf32>,
    %c8_i32_158 = arith.constant 8 : i32
    %272 = arith.muli %arg0, %c8_i32_158 : i32
    %c32_i32_159 = arith.constant 32 : i32
    %273 = arith.addi %c32_i32_159, %272 : i32
    %c2_i32_160 = arith.constant 2 : i32
    %274 = arith.addi %273, %c2_i32_160 : i32
    %275 = arith.index_cast %274 : i32 to index
    %276 = memref.load %arg1[%275] : memref<64xi32, #tpu.memory_space<smem>>
    %277 = arith.index_cast %276 : i32 to index
    %c0_161 = arith.constant 0 : index
    %278 = vector.load %arg2[%277, %c0_161] : memref<16x32xf32, #tpu.memory_space<vmem>>, vector<1x32xf32>
    %c34 = arith.constant 34 : index
    %c0_162 = arith.constant 0 : index
    %279 = vector.load %arg7[%c34, %c0_162] : memref<64x32xf32, #tpu.memory_space<vmem>>, vector<1x32xf32>
    tpu.vector_store %arg7[%c34, %c0_162], %278 {strides = array<i32>} : memref<64x32xf32, #tpu.memory_space<vmem>>, vector<1x32xf32>,
    %c8_i32_163 = arith.constant 8 : i32
    %280 = arith.muli %arg0, %c8_i32_163 : i32
    %c32_i32_164 = arith.constant 32 : i32
    %281 = arith.addi %c32_i32_164, %280 : i32
    %c3_i32_165 = arith.constant 3 : i32
    %282 = arith.addi %281, %c3_i32_165 : i32
    %283 = arith.index_cast %282 : i32 to index
    %284 = memref.load %arg1[%283] : memref<64xi32, #tpu.memory_space<smem>>
    %285 = arith.index_cast %284 : i32 to index
    %c0_166 = arith.constant 0 : index
    %286 = vector.load %arg2[%285, %c0_166] : memref<16x32xf32, #tpu.memory_space<vmem>>, vector<1x32xf32>
    %c35 = arith.constant 35 : index
    %c0_167 = arith.constant 0 : index
    %287 = vector.load %arg7[%c35, %c0_167] : memref<64x32xf32, #tpu.memory_space<vmem>>, vector<1x32xf32>
    tpu.vector_store %arg7[%c35, %c0_167], %286 {strides = array<i32>} : memref<64x32xf32, #tpu.memory_space<vmem>>, vector<1x32xf32>,
    %c8_i32_168 = arith.constant 8 : i32
    %288 = arith.muli %arg0, %c8_i32_168 : i32
    %c32_i32_169 = arith.constant 32 : i32
    %289 = arith.addi %c32_i32_169, %288 : i32
    %c4_i32_170 = arith.constant 4 : i32
    %290 = arith.addi %289, %c4_i32_170 : i32
    %291 = arith.index_cast %290 : i32 to index
    %292 = memref.load %arg1[%291] : memref<64xi32, #tpu.memory_space<smem>>
    %293 = arith.index_cast %292 : i32 to index
    %c0_171 = arith.constant 0 : index
    %294 = vector.load %arg2[%293, %c0_171] : memref<16x32xf32, #tpu.memory_space<vmem>>, vector<1x32xf32>
    %c36 = arith.constant 36 : index
    %c0_172 = arith.constant 0 : index
    %295 = vector.load %arg7[%c36, %c0_172] : memref<64x32xf32, #tpu.memory_space<vmem>>, vector<1x32xf32>
    tpu.vector_store %arg7[%c36, %c0_172], %294 {strides = array<i32>} : memref<64x32xf32, #tpu.memory_space<vmem>>, vector<1x32xf32>,
    %c8_i32_173 = arith.constant 8 : i32
    %296 = arith.muli %arg0, %c8_i32_173 : i32
    %c32_i32_174 = arith.constant 32 : i32
    %297 = arith.addi %c32_i32_174, %296 : i32
    %c5_i32_175 = arith.constant 5 : i32
    %298 = arith.addi %297, %c5_i32_175 : i32
    %299 = arith.index_cast %298 : i32 to index
    %300 = memref.load %arg1[%299] : memref<64xi32, #tpu.memory_space<smem>>
    %301 = arith.index_cast %300 : i32 to index
    %c0_176 = arith.constant 0 : index
    %302 = vector.load %arg2[%301, %c0_176] : memref<16x32xf32, #tpu.memory_space<vmem>>, vector<1x32xf32>
    %c37 = arith.constant 37 : index
    %c0_177 = arith.constant 0 : index
    %303 = vector.load %arg7[%c37, %c0_177] : memref<64x32xf32, #tpu.memory_space<vmem>>, vector<1x32xf32>
    tpu.vector_store %arg7[%c37, %c0_177], %302 {strides = array<i32>} : memref<64x32xf32, #tpu.memory_space<vmem>>, vector<1x32xf32>,
    %c8_i32_178 = arith.constant 8 : i32
    %304 = arith.muli %arg0, %c8_i32_178 : i32
    %c32_i32_179 = arith.constant 32 : i32
    %305 = arith.addi %c32_i32_179, %304 : i32
    %c6_i32_180 = arith.constant 6 : i32
    %306 = arith.addi %305, %c6_i32_180 : i32
    %307 = arith.index_cast %306 : i32 to index
    %308 = memref.load %arg1[%307] : memref<64xi32, #tpu.memory_space<smem>>
    %309 = arith.index_cast %308 : i32 to index
    %c0_181 = arith.constant 0 : index
    %310 = vector.load %arg2[%309, %c0_181] : memref<16x32xf32, #tpu.memory_space<vmem>>, vector<1x32xf32>
    %c38 = arith.constant 38 : index
    %c0_182 = arith.constant 0 : index
    %311 = vector.load %arg7[%c38, %c0_182] : memref<64x32xf32, #tpu.memory_space<vmem>>, vector<1x32xf32>
    tpu.vector_store %arg7[%c38, %c0_182], %310 {strides = array<i32>} : memref<64x32xf32, #tpu.memory_space<vmem>>, vector<1x32xf32>,
    %c8_i32_183 = arith.constant 8 : i32
    %312 = arith.muli %arg0, %c8_i32_183 : i32
    %c32_i32_184 = arith.constant 32 : i32
    %313 = arith.addi %c32_i32_184, %312 : i32
    %c7_i32_185 = arith.constant 7 : i32
    %314 = arith.addi %313, %c7_i32_185 : i32
    %315 = arith.index_cast %314 : i32 to index
    %316 = memref.load %arg1[%315] : memref<64xi32, #tpu.memory_space<smem>>
    %317 = arith.index_cast %316 : i32 to index
    %c0_186 = arith.constant 0 : index
    %318 = vector.load %arg2[%317, %c0_186] : memref<16x32xf32, #tpu.memory_space<vmem>>, vector<1x32xf32>
    %c39 = arith.constant 39 : index
    %c0_187 = arith.constant 0 : index
    %319 = vector.load %arg7[%c39, %c0_187] : memref<64x32xf32, #tpu.memory_space<vmem>>, vector<1x32xf32>
    tpu.vector_store %arg7[%c39, %c0_187], %318 {strides = array<i32>} : memref<64x32xf32, #tpu.memory_space<vmem>>, vector<1x32xf32>,
    %c8_i32_188 = arith.constant 8 : i32
    %320 = arith.muli %arg0, %c8_i32_188 : i32
    %c40_i32 = arith.constant 40 : i32
    %321 = arith.addi %c40_i32, %320 : i32
    %c0_i32_189 = arith.constant 0 : i32
    %322 = arith.addi %321, %c0_i32_189 : i32
    %323 = arith.index_cast %322 : i32 to index
    %324 = memref.load %arg1[%323] : memref<64xi32, #tpu.memory_space<smem>>
    %325 = arith.index_cast %324 : i32 to index
    %c0_190 = arith.constant 0 : index
    %326 = vector.load %arg2[%325, %c0_190] : memref<16x32xf32, #tpu.memory_space<vmem>>, vector<1x32xf32>
    %c40 = arith.constant 40 : index
    %c0_191 = arith.constant 0 : index
    %327 = vector.load %arg7[%c40, %c0_191] : memref<64x32xf32, #tpu.memory_space<vmem>>, vector<1x32xf32>
    tpu.vector_store %arg7[%c40, %c0_191], %326 {strides = array<i32>} : memref<64x32xf32, #tpu.memory_space<vmem>>, vector<1x32xf32>,
    %c8_i32_192 = arith.constant 8 : i32
    %328 = arith.muli %arg0, %c8_i32_192 : i32
    %c40_i32_193 = arith.constant 40 : i32
    %329 = arith.addi %c40_i32_193, %328 : i32
    %c1_i32_194 = arith.constant 1 : i32
    %330 = arith.addi %329, %c1_i32_194 : i32
    %331 = arith.index_cast %330 : i32 to index
    %332 = memref.load %arg1[%331] : memref<64xi32, #tpu.memory_space<smem>>
    %333 = arith.index_cast %332 : i32 to index
    %c0_195 = arith.constant 0 : index
    %334 = vector.load %arg2[%333, %c0_195] : memref<16x32xf32, #tpu.memory_space<vmem>>, vector<1x32xf32>
    %c41 = arith.constant 41 : index
    %c0_196 = arith.constant 0 : index
    %335 = vector.load %arg7[%c41, %c0_196] : memref<64x32xf32, #tpu.memory_space<vmem>>, vector<1x32xf32>
    tpu.vector_store %arg7[%c41, %c0_196], %334 {strides = array<i32>} : memref<64x32xf32, #tpu.memory_space<vmem>>, vector<1x32xf32>,
    %c8_i32_197 = arith.constant 8 : i32
    %336 = arith.muli %arg0, %c8_i32_197 : i32
    %c40_i32_198 = arith.constant 40 : i32
    %337 = arith.addi %c40_i32_198, %336 : i32
    %c2_i32_199 = arith.constant 2 : i32
    %338 = arith.addi %337, %c2_i32_199 : i32
    %339 = arith.index_cast %338 : i32 to index
    %340 = memref.load %arg1[%339] : memref<64xi32, #tpu.memory_space<smem>>
    %341 = arith.index_cast %340 : i32 to index
    %c0_200 = arith.constant 0 : index
    %342 = vector.load %arg2[%341, %c0_200] : memref<16x32xf32, #tpu.memory_space<vmem>>, vector<1x32xf32>
    %c42 = arith.constant 42 : index
    %c0_201 = arith.constant 0 : index
    %343 = vector.load %arg7[%c42, %c0_201] : memref<64x32xf32, #tpu.memory_space<vmem>>, vector<1x32xf32>
    tpu.vector_store %arg7[%c42, %c0_201], %342 {strides = array<i32>} : memref<64x32xf32, #tpu.memory_space<vmem>>, vector<1x32xf32>,
    %c8_i32_202 = arith.constant 8 : i32
    %344 = arith.muli %arg0, %c8_i32_202 : i32
    %c40_i32_203 = arith.constant 40 : i32
    %345 = arith.addi %c40_i32_203, %344 : i32
    %c3_i32_204 = arith.constant 3 : i32
    %346 = arith.addi %345, %c3_i32_204 : i32
    %347 = arith.index_cast %346 : i32 to index
    %348 = memref.load %arg1[%347] : memref<64xi32, #tpu.memory_space<smem>>
    %349 = arith.index_cast %348 : i32 to index
    %c0_205 = arith.constant 0 : index
    %350 = vector.load %arg2[%349, %c0_205] : memref<16x32xf32, #tpu.memory_space<vmem>>, vector<1x32xf32>
    %c43 = arith.constant 43 : index
    %c0_206 = arith.constant 0 : index
    %351 = vector.load %arg7[%c43, %c0_206] : memref<64x32xf32, #tpu.memory_space<vmem>>, vector<1x32xf32>
    tpu.vector_store %arg7[%c43, %c0_206], %350 {strides = array<i32>} : memref<64x32xf32, #tpu.memory_space<vmem>>, vector<1x32xf32>,
    %c8_i32_207 = arith.constant 8 : i32
    %352 = arith.muli %arg0, %c8_i32_207 : i32
    %c40_i32_208 = arith.constant 40 : i32
    %353 = arith.addi %c40_i32_208, %352 : i32
    %c4_i32_209 = arith.constant 4 : i32
    %354 = arith.addi %353, %c4_i32_209 : i32
    %355 = arith.index_cast %354 : i32 to index
    %356 = memref.load %arg1[%355] : memref<64xi32, #tpu.memory_space<smem>>
    %357 = arith.index_cast %356 : i32 to index
    %c0_210 = arith.constant 0 : index
    %358 = vector.load %arg2[%357, %c0_210] : memref<16x32xf32, #tpu.memory_space<vmem>>, vector<1x32xf32>
    %c44 = arith.constant 44 : index
    %c0_211 = arith.constant 0 : index
    %359 = vector.load %arg7[%c44, %c0_211] : memref<64x32xf32, #tpu.memory_space<vmem>>, vector<1x32xf32>
    tpu.vector_store %arg7[%c44, %c0_211], %358 {strides = array<i32>} : memref<64x32xf32, #tpu.memory_space<vmem>>, vector<1x32xf32>,
    %c8_i32_212 = arith.constant 8 : i32
    %360 = arith.muli %arg0, %c8_i32_212 : i32
    %c40_i32_213 = arith.constant 40 : i32
    %361 = arith.addi %c40_i32_213, %360 : i32
    %c5_i32_214 = arith.constant 5 : i32
    %362 = arith.addi %361, %c5_i32_214 : i32
    %363 = arith.index_cast %362 : i32 to index
    %364 = memref.load %arg1[%363] : memref<64xi32, #tpu.memory_space<smem>>
    %365 = arith.index_cast %364 : i32 to index
    %c0_215 = arith.constant 0 : index
    %366 = vector.load %arg2[%365, %c0_215] : memref<16x32xf32, #tpu.memory_space<vmem>>, vector<1x32xf32>
    %c45 = arith.constant 45 : index
    %c0_216 = arith.constant 0 : index
    %367 = vector.load %arg7[%c45, %c0_216] : memref<64x32xf32, #tpu.memory_space<vmem>>, vector<1x32xf32>
    tpu.vector_store %arg7[%c45, %c0_216], %366 {strides = array<i32>} : memref<64x32xf32, #tpu.memory_space<vmem>>, vector<1x32xf32>,
    %c8_i32_217 = arith.constant 8 : i32
    %368 = arith.muli %arg0, %c8_i32_217 : i32
    %c40_i32_218 = arith.constant 40 : i32
    %369 = arith.addi %c40_i32_218, %368 : i32
    %c6_i32_219 = arith.constant 6 : i32
    %370 = arith.addi %369, %c6_i32_219 : i32
    %371 = arith.index_cast %370 : i32 to index
    %372 = memref.load %arg1[%371] : memref<64xi32, #tpu.memory_space<smem>>
    %373 = arith.index_cast %372 : i32 to index
    %c0_220 = arith.constant 0 : index
    %374 = vector.load %arg2[%373, %c0_220] : memref<16x32xf32, #tpu.memory_space<vmem>>, vector<1x32xf32>
    %c46 = arith.constant 46 : index
    %c0_221 = arith.constant 0 : index
    %375 = vector.load %arg7[%c46, %c0_221] : memref<64x32xf32, #tpu.memory_space<vmem>>, vector<1x32xf32>
    tpu.vector_store %arg7[%c46, %c0_221], %374 {strides = array<i32>} : memref<64x32xf32, #tpu.memory_space<vmem>>, vector<1x32xf32>,
    %c8_i32_222 = arith.constant 8 : i32
    %376 = arith.muli %arg0, %c8_i32_222 : i32
    %c40_i32_223 = arith.constant 40 : i32
    %377 = arith.addi %c40_i32_223, %376 : i32
    %c7_i32_224 = arith.constant 7 : i32
    %378 = arith.addi %377, %c7_i32_224 : i32
    %379 = arith.index_cast %378 : i32 to index
    %380 = memref.load %arg1[%379] : memref<64xi32, #tpu.memory_space<smem>>
    %381 = arith.index_cast %380 : i32 to index
    %c0_225 = arith.constant 0 : index
    %382 = vector.load %arg2[%381, %c0_225] : memref<16x32xf32, #tpu.memory_space<vmem>>, vector<1x32xf32>
    %c47 = arith.constant 47 : index
    %c0_226 = arith.constant 0 : index
    %383 = vector.load %arg7[%c47, %c0_226] : memref<64x32xf32, #tpu.memory_space<vmem>>, vector<1x32xf32>
    tpu.vector_store %arg7[%c47, %c0_226], %382 {strides = array<i32>} : memref<64x32xf32, #tpu.memory_space<vmem>>, vector<1x32xf32>,
    %c8_i32_227 = arith.constant 8 : i32
    %384 = arith.muli %arg0, %c8_i32_227 : i32
    %c48_i32 = arith.constant 48 : i32
    %385 = arith.addi %c48_i32, %384 : i32
    %c0_i32_228 = arith.constant 0 : i32
    %386 = arith.addi %385, %c0_i32_228 : i32
    %387 = arith.index_cast %386 : i32 to index
    %388 = memref.load %arg1[%387] : memref<64xi32, #tpu.memory_space<smem>>
    %389 = arith.index_cast %388 : i32 to index
    %c0_229 = arith.constant 0 : index
    %390 = vector.load %arg2[%389, %c0_229] : memref<16x32xf32, #tpu.memory_space<vmem>>, vector<1x32xf32>
    %c48 = arith.constant 48 : index
    %c0_230 = arith.constant 0 : index
    %391 = vector.load %arg7[%c48, %c0_230] : memref<64x32xf32, #tpu.memory_space<vmem>>, vector<1x32xf32>
    tpu.vector_store %arg7[%c48, %c0_230], %390 {strides = array<i32>} : memref<64x32xf32, #tpu.memory_space<vmem>>, vector<1x32xf32>,
    %c8_i32_231 = arith.constant 8 : i32
    %392 = arith.muli %arg0, %c8_i32_231 : i32
    %c48_i32_232 = arith.constant 48 : i32
    %393 = arith.addi %c48_i32_232, %392 : i32
    %c1_i32_233 = arith.constant 1 : i32
    %394 = arith.addi %393, %c1_i32_233 : i32
    %395 = arith.index_cast %394 : i32 to index
    %396 = memref.load %arg1[%395] : memref<64xi32, #tpu.memory_space<smem>>
    %397 = arith.index_cast %396 : i32 to index
    %c0_234 = arith.constant 0 : index
    %398 = vector.load %arg2[%397, %c0_234] : memref<16x32xf32, #tpu.memory_space<vmem>>, vector<1x32xf32>
    %c49 = arith.constant 49 : index
    %c0_235 = arith.constant 0 : index
    %399 = vector.load %arg7[%c49, %c0_235] : memref<64x32xf32, #tpu.memory_space<vmem>>, vector<1x32xf32>
    tpu.vector_store %arg7[%c49, %c0_235], %398 {strides = array<i32>} : memref<64x32xf32, #tpu.memory_space<vmem>>, vector<1x32xf32>,
    %c8_i32_236 = arith.constant 8 : i32
    %400 = arith.muli %arg0, %c8_i32_236 : i32
    %c48_i32_237 = arith.constant 48 : i32
    %401 = arith.addi %c48_i32_237, %400 : i32
    %c2_i32_238 = arith.constant 2 : i32
    %402 = arith.addi %401, %c2_i32_238 : i32
    %403 = arith.index_cast %402 : i32 to index
    %404 = memref.load %arg1[%403] : memref<64xi32, #tpu.memory_space<smem>>
    %405 = arith.index_cast %404 : i32 to index
    %c0_239 = arith.constant 0 : index
    %406 = vector.load %arg2[%405, %c0_239] : memref<16x32xf32, #tpu.memory_space<vmem>>, vector<1x32xf32>
    %c50 = arith.constant 50 : index
    %c0_240 = arith.constant 0 : index
    %407 = vector.load %arg7[%c50, %c0_240] : memref<64x32xf32, #tpu.memory_space<vmem>>, vector<1x32xf32>
    tpu.vector_store %arg7[%c50, %c0_240], %406 {strides = array<i32>} : memref<64x32xf32, #tpu.memory_space<vmem>>, vector<1x32xf32>,
    %c8_i32_241 = arith.constant 8 : i32
    %408 = arith.muli %arg0, %c8_i32_241 : i32
    %c48_i32_242 = arith.constant 48 : i32
    %409 = arith.addi %c48_i32_242, %408 : i32
    %c3_i32_243 = arith.constant 3 : i32
    %410 = arith.addi %409, %c3_i32_243 : i32
    %411 = arith.index_cast %410 : i32 to index
    %412 = memref.load %arg1[%411] : memref<64xi32, #tpu.memory_space<smem>>
    %413 = arith.index_cast %412 : i32 to index
    %c0_244 = arith.constant 0 : index
    %414 = vector.load %arg2[%413, %c0_244] : memref<16x32xf32, #tpu.memory_space<vmem>>, vector<1x32xf32>
    %c51 = arith.constant 51 : index
    %c0_245 = arith.constant 0 : index
    %415 = vector.load %arg7[%c51, %c0_245] : memref<64x32xf32, #tpu.memory_space<vmem>>, vector<1x32xf32>
    tpu.vector_store %arg7[%c51, %c0_245], %414 {strides = array<i32>} : memref<64x32xf32, #tpu.memory_space<vmem>>, vector<1x32xf32>,
    %c8_i32_246 = arith.constant 8 : i32
    %416 = arith.muli %arg0, %c8_i32_246 : i32
    %c48_i32_247 = arith.constant 48 : i32
    %417 = arith.addi %c48_i32_247, %416 : i32
    %c4_i32_248 = arith.constant 4 : i32
    %418 = arith.addi %417, %c4_i32_248 : i32
    %419 = arith.index_cast %418 : i32 to index
    %420 = memref.load %arg1[%419] : memref<64xi32, #tpu.memory_space<smem>>
    %421 = arith.index_cast %420 : i32 to index
    %c0_249 = arith.constant 0 : index
    %422 = vector.load %arg2[%421, %c0_249] : memref<16x32xf32, #tpu.memory_space<vmem>>, vector<1x32xf32>
    %c52 = arith.constant 52 : index
    %c0_250 = arith.constant 0 : index
    %423 = vector.load %arg7[%c52, %c0_250] : memref<64x32xf32, #tpu.memory_space<vmem>>, vector<1x32xf32>
    tpu.vector_store %arg7[%c52, %c0_250], %422 {strides = array<i32>} : memref<64x32xf32, #tpu.memory_space<vmem>>, vector<1x32xf32>,
    %c8_i32_251 = arith.constant 8 : i32
    %424 = arith.muli %arg0, %c8_i32_251 : i32
    %c48_i32_252 = arith.constant 48 : i32
    %425 = arith.addi %c48_i32_252, %424 : i32
    %c5_i32_253 = arith.constant 5 : i32
    %426 = arith.addi %425, %c5_i32_253 : i32
    %427 = arith.index_cast %426 : i32 to index
    %428 = memref.load %arg1[%427] : memref<64xi32, #tpu.memory_space<smem>>
    %429 = arith.index_cast %428 : i32 to index
    %c0_254 = arith.constant 0 : index
    %430 = vector.load %arg2[%429, %c0_254] : memref<16x32xf32, #tpu.memory_space<vmem>>, vector<1x32xf32>
    %c53 = arith.constant 53 : index
    %c0_255 = arith.constant 0 : index
    %431 = vector.load %arg7[%c53, %c0_255] : memref<64x32xf32, #tpu.memory_space<vmem>>, vector<1x32xf32>
    tpu.vector_store %arg7[%c53, %c0_255], %430 {strides = array<i32>} : memref<64x32xf32, #tpu.memory_space<vmem>>, vector<1x32xf32>,
    %c8_i32_256 = arith.constant 8 : i32
    %432 = arith.muli %arg0, %c8_i32_256 : i32
    %c48_i32_257 = arith.constant 48 : i32
    %433 = arith.addi %c48_i32_257, %432 : i32
    %c6_i32_258 = arith.constant 6 : i32
    %434 = arith.addi %433, %c6_i32_258 : i32
    %435 = arith.index_cast %434 : i32 to index
    %436 = memref.load %arg1[%435] : memref<64xi32, #tpu.memory_space<smem>>
    %437 = arith.index_cast %436 : i32 to index
    %c0_259 = arith.constant 0 : index
    %438 = vector.load %arg2[%437, %c0_259] : memref<16x32xf32, #tpu.memory_space<vmem>>, vector<1x32xf32>
    %c54 = arith.constant 54 : index
    %c0_260 = arith.constant 0 : index
    %439 = vector.load %arg7[%c54, %c0_260] : memref<64x32xf32, #tpu.memory_space<vmem>>, vector<1x32xf32>
    tpu.vector_store %arg7[%c54, %c0_260], %438 {strides = array<i32>} : memref<64x32xf32, #tpu.memory_space<vmem>>, vector<1x32xf32>,
    %c8_i32_261 = arith.constant 8 : i32
    %440 = arith.muli %arg0, %c8_i32_261 : i32
    %c48_i32_262 = arith.constant 48 : i32
    %441 = arith.addi %c48_i32_262, %440 : i32
    %c7_i32_263 = arith.constant 7 : i32
    %442 = arith.addi %441, %c7_i32_263 : i32
    %443 = arith.index_cast %442 : i32 to index
    %444 = memref.load %arg1[%443] : memref<64xi32, #tpu.memory_space<smem>>
    %445 = arith.index_cast %444 : i32 to index
    %c0_264 = arith.constant 0 : index
    %446 = vector.load %arg2[%445, %c0_264] : memref<16x32xf32, #tpu.memory_space<vmem>>, vector<1x32xf32>
    %c55 = arith.constant 55 : index
    %c0_265 = arith.constant 0 : index
    %447 = vector.load %arg7[%c55, %c0_265] : memref<64x32xf32, #tpu.memory_space<vmem>>, vector<1x32xf32>
    tpu.vector_store %arg7[%c55, %c0_265], %446 {strides = array<i32>} : memref<64x32xf32, #tpu.memory_space<vmem>>, vector<1x32xf32>,
    %c8_i32_266 = arith.constant 8 : i32
    %448 = arith.muli %arg0, %c8_i32_266 : i32
    %c56_i32 = arith.constant 56 : i32
    %449 = arith.addi %c56_i32, %448 : i32
    %c0_i32_267 = arith.constant 0 : i32
    %450 = arith.addi %449, %c0_i32_267 : i32
    %451 = arith.index_cast %450 : i32 to index
    %452 = memref.load %arg1[%451] : memref<64xi32, #tpu.memory_space<smem>>
    %453 = arith.index_cast %452 : i32 to index
    %c0_268 = arith.constant 0 : index
    %454 = vector.load %arg2[%453, %c0_268] : memref<16x32xf32, #tpu.memory_space<vmem>>, vector<1x32xf32>
    %c56 = arith.constant 56 : index
    %c0_269 = arith.constant 0 : index
    %455 = vector.load %arg7[%c56, %c0_269] : memref<64x32xf32, #tpu.memory_space<vmem>>, vector<1x32xf32>
    tpu.vector_store %arg7[%c56, %c0_269], %454 {strides = array<i32>} : memref<64x32xf32, #tpu.memory_space<vmem>>, vector<1x32xf32>,
    %c8_i32_270 = arith.constant 8 : i32
    %456 = arith.muli %arg0, %c8_i32_270 : i32
    %c56_i32_271 = arith.constant 56 : i32
    %457 = arith.addi %c56_i32_271, %456 : i32
    %c1_i32_272 = arith.constant 1 : i32
    %458 = arith.addi %457, %c1_i32_272 : i32
    %459 = arith.index_cast %458 : i32 to index
    %460 = memref.load %arg1[%459] : memref<64xi32, #tpu.memory_space<smem>>
    %461 = arith.index_cast %460 : i32 to index
    %c0_273 = arith.constant 0 : index
    %462 = vector.load %arg2[%461, %c0_273] : memref<16x32xf32, #tpu.memory_space<vmem>>, vector<1x32xf32>
    %c57 = arith.constant 57 : index
    %c0_274 = arith.constant 0 : index
    %463 = vector.load %arg7[%c57, %c0_274] : memref<64x32xf32, #tpu.memory_space<vmem>>, vector<1x32xf32>
    tpu.vector_store %arg7[%c57, %c0_274], %462 {strides = array<i32>} : memref<64x32xf32, #tpu.memory_space<vmem>>, vector<1x32xf32>,
    %c8_i32_275 = arith.constant 8 : i32
    %464 = arith.muli %arg0, %c8_i32_275 : i32
    %c56_i32_276 = arith.constant 56 : i32
    %465 = arith.addi %c56_i32_276, %464 : i32
    %c2_i32_277 = arith.constant 2 : i32
    %466 = arith.addi %465, %c2_i32_277 : i32
    %467 = arith.index_cast %466 : i32 to index
    %468 = memref.load %arg1[%467] : memref<64xi32, #tpu.memory_space<smem>>
    %469 = arith.index_cast %468 : i32 to index
    %c0_278 = arith.constant 0 : index
    %470 = vector.load %arg2[%469, %c0_278] : memref<16x32xf32, #tpu.memory_space<vmem>>, vector<1x32xf32>
    %c58 = arith.constant 58 : index
    %c0_279 = arith.constant 0 : index
    %471 = vector.load %arg7[%c58, %c0_279] : memref<64x32xf32, #tpu.memory_space<vmem>>, vector<1x32xf32>
    tpu.vector_store %arg7[%c58, %c0_279], %470 {strides = array<i32>} : memref<64x32xf32, #tpu.memory_space<vmem>>, vector<1x32xf32>,
    %c8_i32_280 = arith.constant 8 : i32
    %472 = arith.muli %arg0, %c8_i32_280 : i32
    %c56_i32_281 = arith.constant 56 : i32
    %473 = arith.addi %c56_i32_281, %472 : i32
    %c3_i32_282 = arith.constant 3 : i32
    %474 = arith.addi %473, %c3_i32_282 : i32
    %475 = arith.index_cast %474 : i32 to index
    %476 = memref.load %arg1[%475] : memref<64xi32, #tpu.memory_space<smem>>
    %477 = arith.index_cast %476 : i32 to index
    %c0_283 = arith.constant 0 : index
    %478 = vector.load %arg2[%477, %c0_283] : memref<16x32xf32, #tpu.memory_space<vmem>>, vector<1x32xf32>
    %c59 = arith.constant 59 : index
    %c0_284 = arith.constant 0 : index
    %479 = vector.load %arg7[%c59, %c0_284] : memref<64x32xf32, #tpu.memory_space<vmem>>, vector<1x32xf32>
    tpu.vector_store %arg7[%c59, %c0_284], %478 {strides = array<i32>} : memref<64x32xf32, #tpu.memory_space<vmem>>, vector<1x32xf32>,
    %c8_i32_285 = arith.constant 8 : i32
    %480 = arith.muli %arg0, %c8_i32_285 : i32
    %c56_i32_286 = arith.constant 56 : i32
    %481 = arith.addi %c56_i32_286, %480 : i32
    %c4_i32_287 = arith.constant 4 : i32
    %482 = arith.addi %481, %c4_i32_287 : i32
    %483 = arith.index_cast %482 : i32 to index
    %484 = memref.load %arg1[%483] : memref<64xi32, #tpu.memory_space<smem>>
    %485 = arith.index_cast %484 : i32 to index
    %c0_288 = arith.constant 0 : index
    %486 = vector.load %arg2[%485, %c0_288] : memref<16x32xf32, #tpu.memory_space<vmem>>, vector<1x32xf32>
    %c60 = arith.constant 60 : index
    %c0_289 = arith.constant 0 : index
    %487 = vector.load %arg7[%c60, %c0_289] : memref<64x32xf32, #tpu.memory_space<vmem>>, vector<1x32xf32>
    tpu.vector_store %arg7[%c60, %c0_289], %486 {strides = array<i32>} : memref<64x32xf32, #tpu.memory_space<vmem>>, vector<1x32xf32>,
    %c8_i32_290 = arith.constant 8 : i32
    %488 = arith.muli %arg0, %c8_i32_290 : i32
    %c56_i32_291 = arith.constant 56 : i32
    %489 = arith.addi %c56_i32_291, %488 : i32
    %c5_i32_292 = arith.constant 5 : i32
    %490 = arith.addi %489, %c5_i32_292 : i32
    %491 = arith.index_cast %490 : i32 to index
    %492 = memref.load %arg1[%491] : memref<64xi32, #tpu.memory_space<smem>>
    %493 = arith.index_cast %492 : i32 to index
    %c0_293 = arith.constant 0 : index
    %494 = vector.load %arg2[%493, %c0_293] : memref<16x32xf32, #tpu.memory_space<vmem>>, vector<1x32xf32>
    %c61 = arith.constant 61 : index
    %c0_294 = arith.constant 0 : index
    %495 = vector.load %arg7[%c61, %c0_294] : memref<64x32xf32, #tpu.memory_space<vmem>>, vector<1x32xf32>
    tpu.vector_store %arg7[%c61, %c0_294], %494 {strides = array<i32>} : memref<64x32xf32, #tpu.memory_space<vmem>>, vector<1x32xf32>,
    %c8_i32_295 = arith.constant 8 : i32
    %496 = arith.muli %arg0, %c8_i32_295 : i32
    %c56_i32_296 = arith.constant 56 : i32
    %497 = arith.addi %c56_i32_296, %496 : i32
    %c6_i32_297 = arith.constant 6 : i32
    %498 = arith.addi %497, %c6_i32_297 : i32
    %499 = arith.index_cast %498 : i32 to index
    %500 = memref.load %arg1[%499] : memref<64xi32, #tpu.memory_space<smem>>
    %501 = arith.index_cast %500 : i32 to index
    %c0_298 = arith.constant 0 : index
    %502 = vector.load %arg2[%501, %c0_298] : memref<16x32xf32, #tpu.memory_space<vmem>>, vector<1x32xf32>
    %c62 = arith.constant 62 : index
    %c0_299 = arith.constant 0 : index
    %503 = vector.load %arg7[%c62, %c0_299] : memref<64x32xf32, #tpu.memory_space<vmem>>, vector<1x32xf32>
    tpu.vector_store %arg7[%c62, %c0_299], %502 {strides = array<i32>} : memref<64x32xf32, #tpu.memory_space<vmem>>, vector<1x32xf32>,
    %c8_i32_300 = arith.constant 8 : i32
    %504 = arith.muli %arg0, %c8_i32_300 : i32
    %c56_i32_301 = arith.constant 56 : i32
    %505 = arith.addi %c56_i32_301, %504 : i32
    %c7_i32_302 = arith.constant 7 : i32
    %506 = arith.addi %505, %c7_i32_302 : i32
    %507 = arith.index_cast %506 : i32 to index
    %508 = memref.load %arg1[%507] : memref<64xi32, #tpu.memory_space<smem>>
    %509 = arith.index_cast %508 : i32 to index
    %c0_303 = arith.constant 0 : index
    %510 = vector.load %arg2[%509, %c0_303] : memref<16x32xf32, #tpu.memory_space<vmem>>, vector<1x32xf32>
    %c63 = arith.constant 63 : index
    %c0_304 = arith.constant 0 : index
    %511 = vector.load %arg7[%c63, %c0_304] : memref<64x32xf32, #tpu.memory_space<vmem>>, vector<1x32xf32>
    tpu.vector_store %arg7[%c63, %c0_304], %510 {strides = array<i32>} : memref<64x32xf32, #tpu.memory_space<vmem>>, vector<1x32xf32>,
    %c0_305 = arith.constant 0 : index
    %c0_306 = arith.constant 0 : index
    %512 = vector.load %arg3[%c0_305, %c0_306] : memref<32x32xbf16, #tpu.memory_space<vmem>>, vector<32x32xbf16>
    %cst = arith.constant 0.000000e+00 : f32
    %513 = vector.broadcast %cst : f32 to vector<8x32xf32>
    %c0_307 = arith.constant 0 : index
    %c0_308 = arith.constant 0 : index
    %514 = vector.load %arg7[%c0_307, %c0_308] : memref<64x32xf32, #tpu.memory_space<vmem>>, vector<8x32xf32>
    %515 = arith.truncf %513 : vector<8x32xf32> to vector<8x32xbf16>
    %cst_309 = arith.constant dense<0.000000e+00> : vector<8x32xf32>
    %516 = tpu.matmul %515, %512, %cst_309 {dimension_numbers = #tpu.dot_dimension_numbers<[1], [0], [0], [1], [0, 0, 1, 1], [], []>} : vector<8x32xbf16>, vector<32x32xbf16>, vector<8x32xf32> -> vector<8x32xf32>
    %517 = arith.addf %514, %516 : vector<8x32xf32>
    %518 = math.tanh %517 : vector<8x32xf32>
    %c8_310 = arith.constant 8 : index
    %c0_311 = arith.constant 0 : index
    %519 = vector.load %arg7[%c8_310, %c0_311] : memref<64x32xf32, #tpu.memory_space<vmem>>, vector<8x32xf32>
    %520 = arith.truncf %518 : vector<8x32xf32> to vector<8x32xbf16>
    %cst_312 = arith.constant dense<0.000000e+00> : vector<8x32xf32>
    %521 = tpu.matmul %520, %512, %cst_312 {dimension_numbers = #tpu.dot_dimension_numbers<[1], [0], [0], [1], [0, 0, 1, 1], [], []>} : vector<8x32xbf16>, vector<32x32xbf16>, vector<8x32xf32> -> vector<8x32xf32>
    %522 = arith.addf %519, %521 : vector<8x32xf32>
    %523 = math.tanh %522 : vector<8x32xf32>
    %c16_313 = arith.constant 16 : index
    %c0_314 = arith.constant 0 : index
    %524 = vector.load %arg7[%c16_313, %c0_314] : memref<64x32xf32, #tpu.memory_space<vmem>>, vector<8x32xf32>
    %525 = arith.truncf %523 : vector<8x32xf32> to vector<8x32xbf16>
    %cst_315 = arith.constant dense<0.000000e+00> : vector<8x32xf32>
    %526 = tpu.matmul %525, %512, %cst_315 {dimension_numbers = #tpu.dot_dimension_numbers<[1], [0], [0], [1], [0, 0, 1, 1], [], []>} : vector<8x32xbf16>, vector<32x32xbf16>, vector<8x32xf32> -> vector<8x32xf32>
    %527 = arith.addf %524, %526 : vector<8x32xf32>
    %528 = math.tanh %527 : vector<8x32xf32>
    %c24_316 = arith.constant 24 : index
    %c0_317 = arith.constant 0 : index
    %529 = vector.load %arg7[%c24_316, %c0_317] : memref<64x32xf32, #tpu.memory_space<vmem>>, vector<8x32xf32>
    %530 = arith.truncf %528 : vector<8x32xf32> to vector<8x32xbf16>
    %cst_318 = arith.constant dense<0.000000e+00> : vector<8x32xf32>
    %531 = tpu.matmul %530, %512, %cst_318 {dimension_numbers = #tpu.dot_dimension_numbers<[1], [0], [0], [1], [0, 0, 1, 1], [], []>} : vector<8x32xbf16>, vector<32x32xbf16>, vector<8x32xf32> -> vector<8x32xf32>
    %532 = arith.addf %529, %531 : vector<8x32xf32>
    %533 = math.tanh %532 : vector<8x32xf32>
    %c32_319 = arith.constant 32 : index
    %c0_320 = arith.constant 0 : index
    %534 = vector.load %arg7[%c32_319, %c0_320] : memref<64x32xf32, #tpu.memory_space<vmem>>, vector<8x32xf32>
    %535 = arith.truncf %533 : vector<8x32xf32> to vector<8x32xbf16>
    %cst_321 = arith.constant dense<0.000000e+00> : vector<8x32xf32>
    %536 = tpu.matmul %535, %512, %cst_321 {dimension_numbers = #tpu.dot_dimension_numbers<[1], [0], [0], [1], [0, 0, 1, 1], [], []>} : vector<8x32xbf16>, vector<32x32xbf16>, vector<8x32xf32> -> vector<8x32xf32>
    %537 = arith.addf %534, %536 : vector<8x32xf32>
    %538 = math.tanh %537 : vector<8x32xf32>
    %c40_322 = arith.constant 40 : index
    %c0_323 = arith.constant 0 : index
    %539 = vector.load %arg7[%c40_322, %c0_323] : memref<64x32xf32, #tpu.memory_space<vmem>>, vector<8x32xf32>
    %540 = arith.truncf %538 : vector<8x32xf32> to vector<8x32xbf16>
    %cst_324 = arith.constant dense<0.000000e+00> : vector<8x32xf32>
    %541 = tpu.matmul %540, %512, %cst_324 {dimension_numbers = #tpu.dot_dimension_numbers<[1], [0], [0], [1], [0, 0, 1, 1], [], []>} : vector<8x32xbf16>, vector<32x32xbf16>, vector<8x32xf32> -> vector<8x32xf32>
    %542 = arith.addf %539, %541 : vector<8x32xf32>
    %543 = math.tanh %542 : vector<8x32xf32>
    %c48_325 = arith.constant 48 : index
    %c0_326 = arith.constant 0 : index
    %544 = vector.load %arg7[%c48_325, %c0_326] : memref<64x32xf32, #tpu.memory_space<vmem>>, vector<8x32xf32>
    %545 = arith.truncf %543 : vector<8x32xf32> to vector<8x32xbf16>
    %cst_327 = arith.constant dense<0.000000e+00> : vector<8x32xf32>
    %546 = tpu.matmul %545, %512, %cst_327 {dimension_numbers = #tpu.dot_dimension_numbers<[1], [0], [0], [1], [0, 0, 1, 1], [], []>} : vector<8x32xbf16>, vector<32x32xbf16>, vector<8x32xf32> -> vector<8x32xf32>
    %547 = arith.addf %544, %546 : vector<8x32xf32>
    %548 = math.tanh %547 : vector<8x32xf32>
    %c56_328 = arith.constant 56 : index
    %c0_329 = arith.constant 0 : index
    %549 = vector.load %arg7[%c56_328, %c0_329] : memref<64x32xf32, #tpu.memory_space<vmem>>, vector<8x32xf32>
    %550 = arith.truncf %548 : vector<8x32xf32> to vector<8x32xbf16>
    %cst_330 = arith.constant dense<0.000000e+00> : vector<8x32xf32>
    %551 = tpu.matmul %550, %512, %cst_330 {dimension_numbers = #tpu.dot_dimension_numbers<[1], [0], [0], [1], [0, 0, 1, 1], [], []>} : vector<8x32xbf16>, vector<32x32xbf16>, vector<8x32xf32> -> vector<8x32xf32>
    %552 = arith.addf %549, %551 : vector<8x32xf32>
    %553 = math.tanh %552 : vector<8x32xf32>
    %554 = arith.truncf %553 : vector<8x32xf32> to vector<8x32xbf16>
    %c0_331 = arith.constant 0 : index
    %c0_332 = arith.constant 0 : index
    %555 = vector.load %arg4[%c0_331, %c0_332] : memref<32x128xbf16, #tpu.memory_space<vmem>>, vector<32x128xbf16>
    %cst_333 = arith.constant dense<0.000000e+00> : vector<8x128xf32>
    %556 = tpu.matmul %554, %555, %cst_333 {dimension_numbers = #tpu.dot_dimension_numbers<[1], [0], [0], [1], [0, 0, 1, 1], [], []>} : vector<8x32xbf16>, vector<32x128xbf16>, vector<8x128xf32> -> vector<8x128xf32>
    %c0_334 = arith.constant 0 : index
    %c0_335 = arith.constant 0 : index
    %557 = vector.load %arg5[%c0_334, %c0_335] : memref<1x128xf32, #tpu.memory_space<vmem>>, vector<1x128xf32>
    %558 = vector.broadcast %557 : vector<1x128xf32> to vector<8x128xf32>
    %559 = arith.addf %556, %558 : vector<8x128xf32>
    %cst_336 = arith.constant dense<0xFF800000> : vector<8xf32>
    %560 = vector.multi_reduction <maximumf>, %559, %cst_336 [1] : vector<8x128xf32> to vector<8xf32>
    %561 = vector.shape_cast %560 : vector<8xf32> to vector<8x1xf32>
    %562 = vector.broadcast %561 : vector<8x1xf32> to vector<8x128xf32>
    %563 = arith.subf %559, %562 : vector<8x128xf32>
    %564 = math.exp %563 : vector<8x128xf32>
    %cst_337 = arith.constant dense<0.000000e+00> : vector<8xf32>
    %565 = vector.multi_reduction <add>, %564, %cst_337 [1] : vector<8x128xf32> to vector<8xf32>
    %566 = vector.shape_cast %565 : vector<8xf32> to vector<8x1xf32>
    %567 = tpu.reciprocal %566 : vector<8x1xf32> -> vector<8x1xf32>
    %568 = vector.broadcast %567 : vector<8x1xf32> to vector<8x128xf32>
    %569 = arith.mulf %564, %568 : vector<8x128xf32>
    %c0_338 = arith.constant 0 : index
    %c0_339 = arith.constant 0 : index
    %570 = vector.load %arg6[%c0_338, %c0_339] : memref<8x128xf32, #tpu.memory_space<vmem>>, vector<8x128xf32>
    tpu.vector_store %arg6[%c0_338, %c0_339], %569 {strides = array<i32>} : memref<8x128xf32, #tpu.memory_space<vmem>>, vector<8x128xf32>,
    return
  }
  func.func @transform_0(%arg0: i32, %arg1: memref<64xi32, #tpu.memory_space<smem>>) -> (i32, i32) {
    %c0_i32 = arith.constant 0 : i32
    %c0_i32_0 = arith.constant 0 : i32
    %c0_i32_1 = arith.constant 0 : i32
    return %c0_i32, %c0_i32_0 : i32, i32
  }
  func.func @transform_1(%arg0: i32, %arg1: memref<64xi32, #tpu.memory_space<smem>>) -> (i32, i32) {
    %c0_i32 = arith.constant 0 : i32
    %c0_i32_0 = arith.constant 0 : i32
    %c0_i32_1 = arith.constant 0 : i32
    return %c0_i32, %c0_i32_0 : i32, i32
  }
  func.func @transform_2(%arg0: i32, %arg1: memref<64xi32, #tpu.memory_space<smem>>) -> (i32, i32) {
    %c0_i32 = arith.constant 0 : i32
    %c0_i32_0 = arith.constant 0 : i32
    %c0_i32_1 = arith.constant 0 : i32
    return %c0_i32, %c0_i32_0 : i32, i32
  }
  func.func @transform_3(%arg0: i32, %arg1: memref<64xi32, #tpu.memory_space<smem>>) -> (i32, i32) {
    %c0_i32 = arith.constant 0 : i32
    %c0_i32_0 = arith.constant 0 : i32
    %c0_i32_1 = arith.constant 0 : i32
    return %c0_i32, %c0_i32_0 : i32, i32
  }
  func.func @transform_4(%arg0: i32, %arg1: memref<64xi32, #tpu.memory_space<smem>>) -> (i32, i32) {
    %c0_i32 = arith.constant 0 : i32
    %c0_i32_0 = arith.constant 0 : i32
    return %arg0, %c0_i32 : i32, i32
  }
}

</mosaic_0001>

<bundles_post_ra>
// kernel: rnn_model_forward.1
= control target key start
LH: loop header
LB: loop body
LE: loop exit
PB: predicated region body
PF: predicated region fallthrough
CT: control target
= control target key end

     0   :  { %s826_s21 = smov [#allocation4]   ;;  %s1146_s0 = inlined_call_operand.vmem [shape: s32[64], index: 0, kind: input, shape index: {}]   ;;  %s1147_s1 = inlined_call_operand.vmem [shape: f32[16,32], index: 1, kind: input, shape index: {}]   ;;  %s1148_s2 = inlined_call_operand.vmem [shape: bf16[32,32], index: 2, kind: input, shape index: {}]   ;;  %s1149_s3 = inlined_call_operand.hbm [shape: bf16[32,128], index: 3, kind: input, shape index: {}]   ;;  %s1150_s4 = inlined_call_operand.vmem [shape: f32[1,128], index: 4, kind: input, shape index: {}]   ;;  %s1151_s5 = inlined_call_operand.vmem [shape: f32[8,128], index: 5, kind: output, shape index: {}]  }
   0x1   :  { %s11_s20 = sshll.u32 %s1146_s0, 4  ;;  %s12_s20 = int_to_ptr.vmem [resolvable:$true] %s11_s20 }
   0x2   :  { %14 = dma.vmem_to_smem %s12_s20, 16, %s826_s21, [#allocation3] }
   0x3   :  { %822 = dma.done.wait [#allocation3], 16 }
   0x4   :  { %823 = vsyncadd [#allocation3], 4294967280 }
   0x5   :  { %17 = sfence }
   0x6   :  { %18 = vsyncpa [#allocation6], 0  ;;  %s27_s24 = sshll.u32 %s1149_s3, 4  ;;  %s827_s25 = smov [#allocation5]   ;;  %s28_s24 = int_to_ptr.hbm [resolvable:$true] %s27_s24 }
   0x7   :  { %s29_s26 = sshll.u32 %s827_s25, 4  ;;  %s828_s27 = smov 64   ;;  %s30_s26 = int_to_ptr.vmem [resolvable:$true] %s29_s26 }
   0x8   :  { %s829_s28 = smov 4  }
   0x9   :  { %35 = dma.hbm_to_vmem [thread:$0]  %s28_s24, 256, %s30_s26, [#allocation6], %s828_s27, %s828_s27, %s829_s28  }
   0xa   :  { %824 = dma.done.wait [#allocation6], 256  }
   0xb   :  { %825 = vsyncadd [#allocation6], 4294967040  ;;  %s44_s0 = sld [smem:[#allocation4]]  ;;  %vm47_vm0 = vcmask 253952   ;;  %v757_v0 = vld [vmem:[%s1148_s2 + $0x8] sm:$0xff]  ;;  %v756_v2 = vld [vmem:[%s1148_s2] sm:$0xff] }
   0xc   :  { %s669_s29 = sld [smem:[#allocation4 + $0x1]]  ;;  %391 = vmatpush.bf16.msra.mxu0 %v757_v0  ;;  %411 = vmatpush.bf16.msra.mxu1 %v757_v0  ;;  %v830_v10 = vmov 0   ;;  %vm381_vm1 = vcmask 261120  }
   0xd   :  { %s670_s30 = sld [smem:[#allocation4 + $0x2]]  ;;  %431 = vmatpush.bf16.msra.mxu2 %v757_v0  ;;  %451 = vmatpush.bf16.msra.mxu3 %v757_v0 }
   0xe   :  { %s671_s6 = sld [smem:[#allocation4 + $0x3]] }
   0xf   :  { %s672_s7 = sld [smem:[#allocation4 + $0x4]] }
  0x10   :  { %s673_s8 = sld [smem:[#allocation4 + $0x5]]  ;;  %392 = vmatpush.bf16.msra.mxu0 %v756_v2  ;;  %412 = vmatpush.bf16.msra.mxu1 %v756_v2 }
  0x11   :  { %s45_s12 = scalar_lea.vmem %s1147_s1, %s44_s0  ;;  %s674_s13 = sld [smem:[#allocation4 + $0x6]]  ;;  %432 = vmatpush.bf16.msra.mxu2 %v756_v2  ;;  %452 = vmatpush.bf16.msra.mxu3 %v756_v2 }
  0x12   :  { %v46_v1 = vld [vmem:[%s45_s12] sm:$0x1]  ;;  %s51_s16 = scalar_lea.vmem %s1147_s1, %s669_s29  ;;  %s876_s17 = sld [smem:[#allocation4 + $0x7]] }
  0x13   :  { %48 = vst.msk [vmem:[#allocation2] sm:$0x1] %vm47_vm0, %v46_v1  ;;  %v52_v3 = vld [vmem:[%s51_s16] sm:$0x1]  ;;  %s56_s22 = scalar_lea.vmem %s1147_s1, %s670_s30  ;;  %393 = vmatmul.bf16.vlgmr.msra.gmra.mxu0 %v830_v10  ;;  %s677_s11 = sld [smem:[#allocation4 + $0x9]] }
  0x14   :  { %53 = vst.msk [vmem:[#allocation2 + $0x1] sm:$0x1] %vm47_vm0, %v52_v3  ;;  %v57_v4 = vld [vmem:[%s56_s22] sm:$0x1]  ;;  %s61_s25 = scalar_lea.vmem %s1147_s1, %s671_s6  ;;  %471 = vmatpush.bf16.msrb.mxu0 %v757_v0  ;;  %491 = vmatpush.bf16.msrb.mxu1 %v757_v0  ;;  %s678_s12 = sld [smem:[#allocation4 + $0xa]] }
  0x15   :  { %58 = vst.msk [vmem:[#allocation2 + $0x2] sm:$0x1] %vm47_vm0, %v57_v4  ;;  %v62_v5 = vld [vmem:[%s61_s25] sm:$0x1]  ;;  %s66_s27 = scalar_lea.vmem %s1147_s1, %s672_s7  ;;  %511 = vmatpush.bf16.msrb.mxu2 %v757_v0  ;;  %531 = vmatpush.bf16.msrb.mxu3 %v757_v0  ;;  %s680_s14 = sld [smem:[#allocation4 + $0xc]] }
  0x16   :  { %63 = vst.msk [vmem:[#allocation2 + $0x3] sm:$0x1] %vm47_vm0, %v62_v5  ;;  %v67_v6 = vld [vmem:[%s66_s27] sm:$0x1]  ;;  %s71_s29 = scalar_lea.vmem %s1147_s1, %s673_s8  ;;  %s676_s8 = sld [smem:[#allocation4 + $0x8]] }
  0x17   :  { %68 = vst.msk [vmem:[#allocation2 + $0x4] sm:$0x1] %vm47_vm0, %v67_v6  ;;  %v72_v7 = vld [vmem:[%s71_s29] sm:$0x1]  ;;  %s76_s9 = scalar_lea.vmem %s1147_s1, %s674_s13  ;;  %s679_s13 = sld [smem:[#allocation4 + $0xb]] }
  0x18   :  { %73 = vst.msk [vmem:[#allocation2 + $0x5] sm:$0x1] %vm47_vm0, %v72_v7  ;;  %v77_v8 = vld [vmem:[%s76_s9] sm:$0x1]  ;;  %s81_s3 = scalar_lea.vmem %s1147_s1, %s876_s17  ;;  %472 = vmatpush.bf16.msrb.mxu0 %v756_v2  ;;  %492 = vmatpush.bf16.msrb.mxu1 %v756_v2  ;;  %s681_s15 = sld [smem:[#allocation4 + $0xd]] }
  0x19   :  { %78 = vst.msk [vmem:[#allocation2 + $0x6] sm:$0x1] %vm47_vm0, %v77_v8  ;;  %v82_v9 = vld [vmem:[%s81_s3] sm:$0x1]  ;;  %512 = vmatpush.bf16.msrb.mxu2 %v756_v2  ;;  %532 = vmatpush.bf16.msrb.mxu3 %v756_v2  ;;  %s682_s16 = sld [smem:[#allocation4 + $0xe]]  ;;  %s91_s23 = scalar_lea.vmem %s1147_s1, %s677_s11 }
  0x1a   :  { %83 = vst.msk [vmem:[#allocation2 + $0x7] sm:$0x1] %vm47_vm0, %v82_v9  ;;  %s683_s17 = sld [smem:[#allocation4 + $0xf]]  ;;  %s96_s2 = scalar_lea.vmem %s1147_s1, %s678_s12  ;;  %v92_v12 = vld [vmem:[%s91_s23] sm:$0x1] }
  0x1b   :  { %s106_s30 = scalar_lea.vmem %s1147_s1, %s680_s14  ;;  %v97_v13 = vld [vmem:[%s96_s2] sm:$0x1]  ;;  %93 = vst.msk [vmem:[#allocation2 + $0x9] sm:$0x1] %vm47_vm0, %v92_v12  ;;  %s684_s14 = sld [smem:[#allocation4 + $0x10]] }
  0x1c   :  { %s86_s20 = scalar_lea.vmem %s1147_s1, %s676_s8  ;;  %v107_v15 = vld [vmem:[%s106_s30] sm:$0x1]  ;;  %98 = vst.msk [vmem:[#allocation2 + $0xa] sm:$0x1] %vm47_vm0, %v97_v13  ;;  %s688_s18 = sld [smem:[#allocation4 + $0x14]] }
  0x1d   :  { %s101_s28 = scalar_lea.vmem %s1147_s1, %s679_s13  ;;  %v87_v11 = vld [vmem:[%s86_s20] sm:$0x1]  ;;  %108 = vst.msk [vmem:[#allocation2 + $0xc] sm:$0x1] %vm47_vm0, %v107_v15  ;;  %s689_s19 = sld [smem:[#allocation4 + $0x15]] }
  0x1e   :  { %s111_s7 = scalar_lea.vmem %s1147_s1, %s681_s15  ;;  %88 = vst.msk [vmem:[#allocation2 + $0x8] sm:$0x1] %vm47_vm0, %v87_v11  ;;  %v102_v14 = vld [vmem:[%s101_s28] sm:$0x1]  ;;  %s685_s15 = sld [smem:[#allocation4 + $0x11]] }
  0x1f   :  { %s116_s8 = scalar_lea.vmem %s1147_s1, %s682_s16  ;;  %v112_v16 = vld [vmem:[%s111_s7] sm:$0x1]  ;;  %103 = vst.msk [vmem:[#allocation2 + $0xb] sm:$0x1] %vm47_vm0, %v102_v14  ;;  %s686_s16 = sld [smem:[#allocation4 + $0x12]] }
  0x20   :  { %s121_s13 = scalar_lea.vmem %s1147_s1, %s683_s17  ;;  %v117_v17 = vld [vmem:[%s116_s8] sm:$0x1]  ;;  %113 = vst.msk [vmem:[#allocation2 + $0xd] sm:$0x1] %vm47_vm0, %v112_v16  ;;  %s687_s17 = sld [smem:[#allocation4 + $0x13]] }
  0x21   :  { %v122_v18 = vld [vmem:[%s121_s13] sm:$0x1]  ;;  %118 = vst.msk [vmem:[#allocation2 + $0xe] sm:$0x1] %vm47_vm0, %v117_v17  ;;  %s690_s20 = sld [smem:[#allocation4 + $0x16]]  ;;  %s126_s24 = scalar_lea.vmem %s1147_s1, %s684_s14 }
  0x22   :  { %123 = vst.msk [vmem:[#allocation2 + $0xf] sm:$0x1] %vm47_vm0, %v122_v18  ;;  %v368_v19 = vld [vmem:[#allocation2] sm:$0xff]  ;;  %s691_s21 = sld [smem:[#allocation4 + $0x17]]  ;;  %s146_s10 = scalar_lea.vmem %s1147_s1, %s688_s18 }
  0x23   :  { %v127_v25 = vld [vmem:[%s126_s24] sm:$0x1]  ;;  %s151_s11 = scalar_lea.vmem %s1147_s1, %s689_s19  ;;  %s692_s18 = sld [smem:[#allocation4 + $0x18]] }
  0x24   :  { %s131_s26 = scalar_lea.vmem %s1147_s1, %s685_s15  ;;  %128 = vst.msk [vmem:[#allocation2 + $0x10] sm:$0x1] %vm47_vm0, %v127_v25  ;;  %v147_v29 = vld [vmem:[%s146_s10] sm:$0x1]  ;;  %s693_s19 = sld [smem:[#allocation4 + $0x19]] }
  0x25   :  { %s136_s0 = scalar_lea.vmem %s1147_s1, %s686_s16  ;;  %v132_v26 = vld [vmem:[%s131_s26] sm:$0x1]  ;;  %148 = vst.msk [vmem:[#allocation2 + $0x14] sm:$0x1] %vm47_vm0, %v147_v29  ;;  %s696_s22 = sld [smem:[#allocation4 + $0x1c]] }
  0x26   :  { %s141_s6 = scalar_lea.vmem %s1147_s1, %s687_s17  ;;  %v137_v27 = vld [vmem:[%s136_s0] sm:$0x1]  ;;  %133 = vst.msk [vmem:[#allocation2 + $0x11] sm:$0x1] %vm47_vm0, %v132_v26  ;;  %s697_s23 = sld [smem:[#allocation4 + $0x1d]] }
  0x27   :  { %v142_v28 = vld [vmem:[%s141_s6] sm:$0x1]  ;;  %s156_s14 = scalar_lea.vmem %s1147_s1, %s690_s20  ;;  %138 = vst.msk [vmem:[#allocation2 + $0x12] sm:$0x1] %vm47_vm0, %v137_v27  ;;  %s694_s20 = sld [smem:[#allocation4 + $0x1a]] }
  0x28   :  { %s161_s17 = scalar_lea.vmem %s1147_s1, %s691_s21  ;;  %v152_v30 = vld [vmem:[%s151_s11] sm:$0x1]  ;;  %143 = vst.msk [vmem:[#allocation2 + $0x13] sm:$0x1] %vm47_vm0, %v142_v28  ;;  %s695_s21 = sld [smem:[#allocation4 + $0x1b]] }
  0x29   :  { %v157_v31 = vld [vmem:[%s156_s14] sm:$0x1]  ;;  %153 = vst.msk [vmem:[#allocation2 + $0x15] sm:$0x1] %vm47_vm0, %v152_v30  ;;  %v400_v33 = vld [vmem:[#allocation2 + $0x8] sm:$0xff]  ;;  %s698_s24 = sld [smem:[#allocation4 + $0x1e]]  ;;  %s166_s27 = scalar_lea.vmem %s1147_s1, %s692_s18 }
  0x2a   :  { %v162_v32 = vld [vmem:[%s161_s17] sm:$0x1]  ;;  %158 = vst.msk [vmem:[#allocation2 + $0x16] sm:$0x1] %vm47_vm0, %v157_v31  ;;  %s699_s25 = sld [smem:[#allocation4 + $0x1f]]  ;;  %s171_s29 = scalar_lea.vmem %s1147_s1, %s693_s19  ;;  %v759_v31 = vld [vmem:[#allocation5 + $0x8] sm:$0xff] }
  0x2b   :  { %163 = vst.msk [vmem:[#allocation2 + $0x17] sm:$0x1] %vm47_vm0, %v162_v32  ;;  %s186_s12 = scalar_lea.vmem %s1147_s1, %s696_s22  ;;  %v167_v39 = vld [vmem:[%s166_s27] sm:$0x1]  ;;  %s700_s22 = sld [smem:[#allocation4 + $0x20]]  ;;  %570 = vmatpush.bf16.msra.mxu0 %v759_v31 }
  0x2c   :  { %v172_v40 = vld [vmem:[%s171_s29] sm:$0x1]  ;;  %s191_s15 = scalar_lea.vmem %s1147_s1, %s697_s23  ;;  %168 = vst.msk [vmem:[#allocation2 + $0x18] sm:$0x1] %vm47_vm0, %v167_v39  ;;  %s701_s23 = sld [smem:[#allocation4 + $0x21]] }
  0x2d   :  { %s176_s9 = scalar_lea.vmem %s1147_s1, %s694_s20  ;;  %173 = vst.msk [vmem:[#allocation2 + $0x19] sm:$0x1] %vm47_vm0, %v172_v40  ;;  %v187_v43 = vld [vmem:[%s186_s12] sm:$0x1]  ;;  %s704_s2 = sld [smem:[#allocation4 + $0x24]] }
  0x2e   :  { %s181_s3 = scalar_lea.vmem %s1147_s1, %s695_s21  ;;  %v177_v41 = vld [vmem:[%s176_s9] sm:$0x1]  ;;  %188 = vst.msk [vmem:[#allocation2 + $0x1c] sm:$0x1] %vm47_vm0, %v187_v43  ;;  %s705_s26 = sld [smem:[#allocation4 + $0x25]] }
  0x2f   :  { %v182_v42 = vld [vmem:[%s181_s3] sm:$0x1]  ;;  %s196_s18 = scalar_lea.vmem %s1147_s1, %s698_s24  ;;  %178 = vst.msk [vmem:[#allocation2 + $0x1a] sm:$0x1] %vm47_vm0, %v177_v41  ;;  %s702_s24 = sld [smem:[#allocation4 + $0x22]] }
  0x30   :  { %s201_s21 = scalar_lea.vmem %s1147_s1, %s699_s25  ;;  %v192_v44 = vld [vmem:[%s191_s15] sm:$0x1]  ;;  %183 = vst.msk [vmem:[#allocation2 + $0x1b] sm:$0x1] %vm47_vm0, %v182_v42  ;;  %s703_s25 = sld [smem:[#allocation4 + $0x23]] }
  0x31   :  { %v197_v45 = vld [vmem:[%s196_s18] sm:$0x1]  ;;  %193 = vst.msk [vmem:[#allocation2 + $0x1d] sm:$0x1] %vm47_vm0, %v192_v44  ;;  %s706_s27 = sld [smem:[#allocation4 + $0x26]]  ;;  %s206_s30 = scalar_lea.vmem %s1147_s1, %s700_s22 }
  0x32   :  { %v202_v46 = vld [vmem:[%s201_s21] sm:$0x1]  ;;  %198 = vst.msk [vmem:[#allocation2 + $0x1e] sm:$0x1] %vm47_vm0, %v197_v45  ;;  %v420_v47 = vld [vmem:[#allocation2 + $0x10] sm:$0xff]  ;;  %s707_s28 = sld [smem:[#allocation4 + $0x27]]  ;;  %s211_s7 = scalar_lea.vmem %s1147_s1, %s701_s23 }
  0x33   :  { %203 = vst.msk [vmem:[#allocation2 + $0x1f] sm:$0x1] %vm47_vm0, %v202_v46  ;;  %s226_s16 = scalar_lea.vmem %s1147_s1, %s704_s2  ;;  %v207_v53 = vld [vmem:[%s206_s30] sm:$0x1]  ;;  %s708_s2 = sld [smem:[#allocation4 + $0x28]] }
  0x34   :  { %v212_v54 = vld [vmem:[%s211_s7] sm:$0x1]  ;;  %s231_s19 = scalar_lea.vmem %s1147_s1, %s705_s26  ;;  %208 = vst.msk [vmem:[#allocation2 + $0x20] sm:$0x1] %vm47_vm0, %v207_v53  ;;  %s709_s26 = sld [smem:[#allocation4 + $0x29]] }
  0x35   :  { %s216_s8 = scalar_lea.vmem %s1147_s1, %s702_s24  ;;  %213 = vst.msk [vmem:[#allocation2 + $0x21] sm:$0x1] %vm47_vm0, %v212_v54  ;;  %v227_v57 = vld [vmem:[%s226_s16] sm:$0x1]  ;;  %s712_s0 = sld [smem:[#allocation4 + $0x2c]] }
  0x36   :  { %s221_s13 = scalar_lea.vmem %s1147_s1, %s703_s25  ;;  %v217_v55 = vld [vmem:[%s216_s8] sm:$0x1]  ;;  %228 = vst.msk [vmem:[#allocation2 + $0x24] sm:$0x1] %vm47_vm0, %v227_v57  ;;  %s713_s29 = sld [smem:[#allocation4 + $0x2d]] }
  0x37   :  { %v222_v56 = vld [vmem:[%s221_s13] sm:$0x1]  ;;  %s236_s22 = scalar_lea.vmem %s1147_s1, %s706_s27  ;;  %218 = vst.msk [vmem:[#allocation2 + $0x22] sm:$0x1] %vm47_vm0, %v217_v55  ;;  %s710_s27 = sld [smem:[#allocation4 + $0x2a]] }
  0x38   :  { %s241_s25 = scalar_lea.vmem %s1147_s1, %s707_s28  ;;  %v232_v58 = vld [vmem:[%s231_s19] sm:$0x1]  ;;  %223 = vst.msk [vmem:[#allocation2 + $0x23] sm:$0x1] %vm47_vm0, %v222_v56  ;;  %s711_s28 = sld [smem:[#allocation4 + $0x2b]] }
  0x39   :  { %v237_v59 = vld [vmem:[%s236_s22] sm:$0x1]  ;;  %233 = vst.msk [vmem:[#allocation2 + $0x25] sm:$0x1] %vm47_vm0, %v232_v58  ;;  %s714_s30 = sld [smem:[#allocation4 + $0x2e]]  ;;  %s246_s10 = scalar_lea.vmem %s1147_s1, %s708_s2 }
  0x3a   :  { %v242_v60 = vld [vmem:[%s241_s25] sm:$0x1]  ;;  %238 = vst.msk [vmem:[#allocation2 + $0x26] sm:$0x1] %vm47_vm0, %v237_v59  ;;  %v440_v61 = vld [vmem:[#allocation2 + $0x18] sm:$0xff]  ;;  %s715_s6 = sld [smem:[#allocation4 + $0x2f]]  ;;  %s251_s11 = scalar_lea.vmem %s1147_s1, %s709_s26 }
  0x3b   :  { %243 = vst.msk [vmem:[#allocation2 + $0x27] sm:$0x1] %vm47_vm0, %v242_v60  ;;  %s266_s20 = scalar_lea.vmem %s1147_s1, %s712_s0  ;;  %v247_v3 = vld [vmem:[%s246_s10] sm:$0x1]  ;;  %s716_s0 = sld [smem:[#allocation4 + $0x30]] }
  0x3c   :  { %v252_v4 = vld [vmem:[%s251_s11] sm:$0x1]  ;;  %s271_s23 = scalar_lea.vmem %s1147_s1, %s713_s29  ;;  %248 = vst.msk [vmem:[#allocation2 + $0x28] sm:$0x1] %vm47_vm0, %v247_v3  ;;  %s717_s29 = sld [smem:[#allocation4 + $0x31]] }
  0x3d   :  { %s256_s14 = scalar_lea.vmem %s1147_s1, %s710_s27  ;;  %253 = vst.msk [vmem:[#allocation2 + $0x29] sm:$0x1] %vm47_vm0, %v252_v4  ;;  %v267_v7 = vld [vmem:[%s266_s20] sm:$0x1]  ;;  %s720_s9 = sld [smem:[#allocation4 + $0x34]] }
  0x3e   :  { %s261_s17 = scalar_lea.vmem %s1147_s1, %s711_s28  ;;  %v257_v5 = vld [vmem:[%s256_s14] sm:$0x1]  ;;  %268 = vst.msk [vmem:[#allocation2 + $0x2c] sm:$0x1] %vm47_vm0, %v267_v7  ;;  %s721_s7 = sld [smem:[#allocation4 + $0x35]] }
  0x3f   :  { %v262_v6 = vld [vmem:[%s261_s17] sm:$0x1]  ;;  %s276_s2 = scalar_lea.vmem %s1147_s1, %s714_s30  ;;  %258 = vst.msk [vmem:[#allocation2 + $0x2a] sm:$0x1] %vm47_vm0, %v257_v5  ;;  %s718_s30 = sld [smem:[#allocation4 + $0x32]] }
  0x40   :  { %s281_s28 = scalar_lea.vmem %s1147_s1, %s715_s6  ;;  %v272_v8 = vld [vmem:[%s271_s23] sm:$0x1]  ;;  %263 = vst.msk [vmem:[#allocation2 + $0x2b] sm:$0x1] %vm47_vm0, %v262_v6  ;;  %s719_s6 = sld [smem:[#allocation4 + $0x33]] }
  0x41   :  { %v277_v9 = vld [vmem:[%s276_s2] sm:$0x1]  ;;  %273 = vst.msk [vmem:[#allocation2 + $0x2d] sm:$0x1] %vm47_vm0, %v272_v8  ;;  %s722_s10 = sld [smem:[#allocation4 + $0x36]]  ;;  %s286_s12 = scalar_lea.vmem %s1147_s1, %s716_s0 }
  0x42   :  { %v282_v10 = vld [vmem:[%s281_s28] sm:$0x1]  ;;  %278 = vst.msk [vmem:[#allocation2 + $0x2e] sm:$0x1] %vm47_vm0, %v277_v9  ;;  %s723_s3 = sld [smem:[#allocation4 + $0x37]]  ;;  %s291_s15 = scalar_lea.vmem %s1147_s1, %s717_s29 }
  0x43   :  { %283 = vst.msk [vmem:[#allocation2 + $0x2f] sm:$0x1] %vm47_vm0, %v282_v10  ;;  %v460_v11 = vld [vmem:[#allocation2 + $0x20] sm:$0xff]  ;;  %s306_s24 = scalar_lea.vmem %s1147_s1, %s720_s9  ;;  %s724_s9 = sld [smem:[#allocation4 + $0x38]] }
  0x44   :  { %v287_v17 = vld [vmem:[%s286_s12] sm:$0x1]  ;;  %s311_s26 = scalar_lea.vmem %s1147_s1, %s721_s7  ;;  %s725_s7 = sld [smem:[#allocation4 + $0x39]] }
  0x45   :  { %s296_s18 = scalar_lea.vmem %s1147_s1, %s718_s30  ;;  %v292_v18 = vld [vmem:[%s291_s15] sm:$0x1]  ;;  %288 = vst.msk [vmem:[#allocation2 + $0x30] sm:$0x1] %vm47_vm0, %v287_v17  ;;  %s728_s8 = sld [smem:[#allocation4 + $0x3c]] }
  0x46   :  { %s301_s21 = scalar_lea.vmem %s1147_s1, %s719_s6  ;;  %293 = vst.msk [vmem:[#allocation2 + $0x31] sm:$0x1] %vm47_vm0, %v292_v18  ;;  %s729_s11 = sld [smem:[#allocation4 + $0x3d]]  ;;  %v758_v46 = vld [vmem:[#allocation5] sm:$0xff] }
  0x47   :  { %s316_s0 = scalar_lea.vmem %s1147_s1, %s722_s10  ;;  %s726_s10 = sld [smem:[#allocation4 + $0x3a]]  ;;  %571 = vmatpush.bf16.msra.mxu0 %v758_v46  ;;  %v765_v53 = vld [vmem:[%s1150_s4] ss:$0 sm:$0xff] }
  0x48   :  { %s321_s6 = scalar_lea.vmem %s1147_s1, %s723_s3  ;;  %s727_s3 = sld [smem:[#allocation4 + $0x3b]] }
  0x49   :  { %s730_s12 = sld [smem:[#allocation4 + $0x3e]]  ;;  %s326_s16 = scalar_lea.vmem %s1147_s1, %s724_s9 }
  0x4a   :  { %v480_v25 = vld [vmem:[#allocation2 + $0x28] sm:$0xff]  ;;  %s731_s13 = sld [smem:[#allocation4 + $0x3f]]  ;;  %s331_s19 = scalar_lea.vmem %s1147_s1, %s725_s7  ;;  %v327_v32 = vld [vmem:[%s326_s16] sm:$0x1] }
  0x4b   :  { %s346_s27 = scalar_lea.vmem %s1147_s1, %s728_s8  ;;  %328 = vst.msk [vmem:[#allocation2 + $0x38] sm:$0x1] %vm47_vm0, %v327_v32 }
  0x4c   :  { %s351_s29 = scalar_lea.vmem %s1147_s1, %s729_s11 }
  0x4d   :  { %s336_s22 = scalar_lea.vmem %s1147_s1, %s726_s10 }
  0x4e   :  { %s341_s25 = scalar_lea.vmem %s1147_s1, %s727_s3 }
  0x4f   :  { %s356_s9 = scalar_lea.vmem %s1147_s1, %s730_s12 }
  0x50   :  { %s361_s3 = scalar_lea.vmem %s1147_s1, %s731_s13 }
  0x51   :  { %v362_v39 = vld [vmem:[%s361_s3] sm:$0x1] }
  0x52   :  { %363 = vst.msk [vmem:[#allocation2 + $0x3f] sm:$0x1] %vm47_vm0, %v362_v39 }
  0x90   :  { %v394_v20 = vpop.f32.mrf.mxu0 }
  0x91   :  { %v398_v21 = vadd.f32 %v394_v20, %v368_v19  ;;  %v297_v19 = vld [vmem:[%s296_s18] sm:$0x1] }
  0x92   :  { %v302_v20 = vld [vmem:[%s301_s21] sm:$0x1]  ;;  %298 = vst.msk [vmem:[#allocation2 + $0x32] sm:$0x1] %vm47_vm0, %v297_v19 }
  0x93   :  { %766 = vtanh.f32 %v398_v21  ;;  %v307_v21 = vld [vmem:[%s306_s24] sm:$0x1]  ;;  %303 = vst.msk [vmem:[#allocation2 + $0x33] sm:$0x1] %vm47_vm0, %v302_v20 }
  0x94   :  { %308 = vst.msk [vmem:[#allocation2 + $0x34] sm:$0x1] %vm47_vm0, %v307_v21 }
  0x98   :  { %v396_v22 = vpop.f32.mrf.mxu0 }
  0x99   :  { %v767_v23 = vpop.eup %766  ;;  %v312_v22 = vld [vmem:[%s311_s26] sm:$0x1] }
  0x9a   :  { %v401_v24 = vpack.c.bf16 %v767_v23, %v767_v23  ;;  %v317_v23 = vld [vmem:[%s316_s0] sm:$0x1]  ;;  %313 = vst.msk [vmem:[#allocation2 + $0x35] sm:$0x1] %vm47_vm0, %v312_v22 }
  0x9b   :  { %318 = vst.msk [vmem:[#allocation2 + $0x36] sm:$0x1] %vm47_vm0, %v317_v23 }
  0x9c   :  { %740 = vmatmul.msk.bf16.vlgmr.msra.gmra.mxu1 %vm381_vm1, %v401_v24  ;;  %v322_v24 = vld [vmem:[%s321_s6] sm:$0x1] }
  0x9d   :  { %323 = vst.msk [vmem:[#allocation2 + $0x37] sm:$0x1] %vm47_vm0, %v322_v24 }
  0xa4   :  { %v500_v40 = vld [vmem:[#allocation2 + $0x30] sm:$0xff] }
 0x119   :  { %v414_v34 = vpop.f32.mrf.mxu1 }
 0x11a   :  { %v418_v35 = vadd.f32 %v414_v34, %v400_v33  ;;  %v332_v33 = vld [vmem:[%s331_s19] sm:$0x1] }
 0x11b   :  { %v337_v34 = vld [vmem:[%s336_s22] sm:$0x1]  ;;  %333 = vst.msk [vmem:[#allocation2 + $0x39] sm:$0x1] %vm47_vm0, %v332_v33 }
 0x11c   :  { %768 = vtanh.f32 %v418_v35  ;;  %v342_v35 = vld [vmem:[%s341_s25] sm:$0x1]  ;;  %338 = vst.msk [vmem:[#allocation2 + $0x3a] sm:$0x1] %vm47_vm0, %v337_v34 }
 0x11d   :  { %343 = vst.msk [vmem:[#allocation2 + $0x3b] sm:$0x1] %vm47_vm0, %v342_v35 }
 0x121   :  { %v416_v36 = vpop.f32.mrf.mxu1 }
 0x122   :  { %v769_v37 = vpop.eup %768  ;;  %v347_v36 = vld [vmem:[%s346_s27] sm:$0x1] }
 0x123   :  { %v421_v38 = vpack.c.bf16 %v769_v37, %v769_v37  ;;  %v352_v37 = vld [vmem:[%s351_s29] sm:$0x1]  ;;  %348 = vst.msk [vmem:[#allocation2 + $0x3c] sm:$0x1] %vm47_vm0, %v347_v36 }
 0x124   :  { %353 = vst.msk [vmem:[#allocation2 + $0x3d] sm:$0x1] %vm47_vm0, %v352_v37 }
 0x125   :  { %741 = vmatmul.msk.bf16.vlgmr.msra.gmra.mxu2 %vm381_vm1, %v421_v38  ;;  %v357_v38 = vld [vmem:[%s356_s9] sm:$0x1] }
 0x126   :  { %358 = vst.msk [vmem:[#allocation2 + $0x3e] sm:$0x1] %vm47_vm0, %v357_v38 }
 0x1a8   :  { %v434_v48 = vpop.f32.mrf.mxu2 }
 0x1a9   :  { %v438_v49 = vadd.f32 %v434_v48, %v420_v47  ;;  %v520_v47 = vld [vmem:[#allocation2 + $0x38] sm:$0xff] }
 0x1ab   :  { %770 = vtanh.f32 %v438_v49 }
 0x1b0   :  { %v436_v50 = vpop.f32.mrf.mxu2 }
 0x1b1   :  { %v771_v51 = vpop.eup %770 }
 0x1b2   :  { %v441_v52 = vpack.c.bf16 %v771_v51, %v771_v51 }
 0x1b4   :  { %742 = vmatmul.msk.bf16.vlgmr.msra.gmra.mxu3 %vm381_vm1, %v441_v52 }
 0x237   :  { %v454_v62 = vpop.f32.mrf.mxu3 }
 0x238   :  { %v458_v63 = vadd.f32 %v454_v62, %v440_v61 }
 0x23a   :  { %772 = vtanh.f32 %v458_v63 }
 0x23f   :  { %v456_v0 = vpop.f32.mrf.mxu3 }
 0x240   :  { %v773_v1 = vpop.eup %772 }
 0x241   :  { %v461_v2 = vpack.c.bf16 %v773_v1, %v773_v1 }
 0x243   :  { %743 = vmatmul.msk.bf16.vlgmr.msrb.gmra.mxu0 %vm381_vm1, %v461_v2 }
 0x2c0   :  { %v474_v12 = vpop.f32.mrf.mxu0 }
 0x2c1   :  { %v478_v13 = vadd.f32 %v474_v12, %v460_v11 }
 0x2c3   :  { %774 = vtanh.f32 %v478_v13 }
 0x2c8   :  { %v476_v14 = vpop.f32.mrf.mxu0 }
 0x2c9   :  { %v775_v15 = vpop.eup %774 }
 0x2ca   :  { %v481_v16 = vpack.c.bf16 %v775_v15, %v775_v15 }
 0x2cc   :  { %744 = vmatmul.msk.bf16.vlgmr.msrb.gmra.mxu1 %vm381_vm1, %v481_v16 }
 0x349   :  { %v494_v26 = vpop.f32.mrf.mxu1 }
 0x34a   :  { %v498_v27 = vadd.f32 %v494_v26, %v480_v25 }
 0x34c   :  { %776 = vtanh.f32 %v498_v27 }
 0x351   :  { %v496_v28 = vpop.f32.mrf.mxu1 }
 0x352   :  { %v777_v29 = vpop.eup %776 }
 0x353   :  { %v501_v30 = vpack.c.bf16 %v777_v29, %v777_v29 }
 0x355   :  { %745 = vmatmul.msk.bf16.vlgmr.msrb.gmra.mxu2 %vm381_vm1, %v501_v30 }
 0x3d8   :  { %v514_v41 = vpop.f32.mrf.mxu2 }
 0x3d9   :  { %v518_v42 = vadd.f32 %v514_v41, %v500_v40 }
 0x3db   :  { %778 = vtanh.f32 %v518_v42 }
 0x3e0   :  { %v516_v43 = vpop.f32.mrf.mxu2 }
 0x3e1   :  { %v779_v44 = vpop.eup %778 }
 0x3e2   :  { %v521_v45 = vpack.c.bf16 %v779_v44, %v779_v44 }
 0x3e4   :  { %746 = vmatmul.msk.bf16.vlgmr.msrb.gmra.mxu3 %vm381_vm1, %v521_v45 }
 0x467   :  { %v534_v48 = vpop.f32.mrf.mxu3 }
 0x468   :  { %v538_v49 = vadd.f32 %v534_v48, %v520_v47 }
 0x46a   :  { %780 = vtanh.f32 %v538_v49 }
 0x46f   :  { %v536_v50 = vpop.f32.mrf.mxu3 }
 0x470   :  { %v781_v51 = vpop.eup %780 }
 0x471   :  { %v540_v52 = vpack.c.bf16 %v781_v51, %v781_v51 }
 0x473   :  { %755 = vmatmul.msk.bf16.vlgmr.msra.gmra.mxu0 %vm381_vm1, %v540_v52 }
 0x4f0   :  { %v573_v54 = vpop.f32.mrf.mxu0 }
 0x4f1   :  { %v574_v55 = vadd.f32 %v765_v53, %v573_v54 }
 0x4f3   :  { %577 = vmax.xlane.f32.xlu0 %v574_v55 }
 0x4f8   :  { %v575_v56 = vpop.f32.mrf.mxu0 }
 0x566   :  { %v578_v57 = vpop.xlane.xlu0 %577 }
 0x567   :  { %v579_v58 = vsub.f32 %v574_v55, %v578_v57 }
 0x569   :  { %v580_v59 = vmul.f32 1.442695, %v579_v58 }
 0x56b   :  { %782 = vpow2.f32 %v580_v59 }
 0x571   :  { %v783_v60 = vpop.eup %782 }
 0x572   :  { %582 = vadd.xlane.f32.xlu0 %v783_v60 }
 0x5e5   :  { %v583_v61 = vpop.xlane.xlu0 %582 }
 0x5e6   :  { %784 = vrcp.f32 %v583_v61  ;;  %v595_v1 = vand.u32 2147483648, %v583_v61  ;;  %v593_v3 = vand.u32 2147483647, %v583_v61  ;;  %vm589_vm3 = vweird.f32 %v583_v61 }
 0x5e8   :  { %v596_v5 = vor.u32 1.1754944e-38, %v595_v1  ;;  %vm594_vm5 = vcmp.eq.f32.partialorder %v593_v3, 8.507059e+37 }
 0x5ec   :  { %v785_v62 = vpop.eup %784 }
 0x5ed   :  { %v585_v63 = vmul.f32 %v785_v62, %v583_v61  ;;  %vm590_vm2 = vweird.f32 %v785_v62 }
 0x5ee   :  { %vm591_vm4 = vmor %vm589_vm3, %vm590_vm2 }
 0x5ef   :  { %v586_v0 = vsub.f32 1.0, %v585_v63 }
 0x5f1   :  { %v587_v2 = vmul.f32 %v785_v62, %v586_v0 }
 0x5f3   :  { %v588_v4 = vadd.f32 %v785_v62, %v587_v2 }
 0x5f5   :  { %v592_v6 = vsel %vm591_vm4, %v785_v62, %v588_v4 }
 0x5f6   :  { %v597_v7 = vsel %vm594_vm5, %v596_v5, %v592_v6 }
 0x5f7   :  { %v598_v8 = vmul.f32 %v783_v60, %v597_v7 }
 0x5f9   :  { %599 = vst [vmem:[%s1151_s5] sm:$0xff] %v598_v8 }
 0x5fa   :  { %604 = vsyncpa [#allocation6], 1 }

</bundles_post_ra>
